<compile_context>
chip_gen: v5e
topology: v5e:2x2
jax: 0.10.0
libtpu: 0.0.40
codegen_flags: <defaults>
</compile_context>

<pallas_src>
import numpy as np
import jax
import jax.numpy as jnp
from jax import lax
from jax.experimental import pallas as pl
from jax.experimental.pallas import tpu as pltpu

BN_EPS = 1e-5
MATMUL_DTYPE = jnp.bfloat16        # MXU operand dtype for the convolutions


# --------------------------------------------------------------------------- in-kernel conv

def _conv3x3(a, w_ref, b_ref, Wp, M):
    """3x3 'same' conv on one image in padded-flat, channel-major layout.

    a      : (Cin, M) bf16 value, M = Hp*Wp of the zero-padded grid; padded border
             rows/cols MUST be zero (they are the conv padding).
    w_ref  : (Cout, 9*Cin) bf16 ref, K laid out as (ky, kx, ci), BN scale pre-folded.
    b_ref  : (Cout, 1) f32 ref (bias / folded-BN shift).
    Returns (Cout, M) f32 = conv + bias.  Values at padded-border output positions are
    garbage (bias + partial sums) and must be masked by the caller.
    """
    Cin = a.shape[0]
    G = Wp + 1                                         # guard >= max |tap shift|
    zeros = jnp.zeros((Cin, G), a.dtype)
    a_ext = jnp.concatenate([zeros, a, zeros], axis=1)              # (Cin, M + 2G)
    taps = []
    for ky in range(3):
        for kx in range(3):
            d = (ky - 1) * Wp + (kx - 1)               # flat shift of this tap
            taps.append(a_ext[:, G + d:G + d + M])     # static lane-slice, in registers
    im2col = jnp.concatenate(taps, axis=0)                           # (9*Cin, M) bf16
    f = jnp.dot(w_ref[...], im2col, preferred_element_type=jnp.float32)
    return f + b_ref[...]


# --------------------------------------------------------------------------- fused kernel

def _make_encoder_kernel(cfg):
    blocks = cfg['blocks']

    def kernel(*refs):
        it = iter(refs)
        x_ref = next(it)
        stem_w, stem_b = next(it), next(it)
        blk = []
        for b in blocks:
            r = [next(it), next(it), next(it), next(it)]
            if b['has_sc']:
                r += [next(it), next(it)]
            blk.append(r)
        wproj_ref, bproj_ref = next(it), next(it)
        masks = [next(it) for _ in range(cfg['n_masks'])]
        sels = [next(it) for _ in range(cfg['n_sels'])]
        out_ref = next(it)

        # ---- stem: 3x3 conv + bias (no BN / ReLU in the reference stem) ----------------
        st = cfg['stem']
        x = x_ref[0].astype(MATMUL_DTYPE)                            # (Cin_pad, M0)
        h = _conv3x3(x, stem_w, stem_b, st['Wp'], st['M'])
        h = h * masks[st['mask_idx']][...]                           # re-zero padded border

        # ---- residual blocks ------------------------------------------------------------
        for b, r in zip(blocks, blk):
            w1_ref, b1_ref, w2_ref, b2_ref = r[:4]
            mask_out = masks[b['mask_out_idx']][...]

            # conv1 (+ folded bn1)
            f1 = _conv3x3(h.astype(MATMUL_DTYPE), w1_ref, b1_ref, b['Wp_in'], b['M_in'])
            if b['stride'] == 2:
                # stride-2: gather every-other interior pixel onto the smaller padded
                # grid with a per-image 0/1 select matrix, kept in f32 (exact gather).
                sel = sels[b['sel_idx']][...]                        # (M_in, M_out) f32
                f1 = jnp.dot(f1, sel, preferred_element_type=jnp.float32)
                x_id = jnp.dot(h, sel, preferred_element_type=jnp.float32)
            else:
                x_id = h
            h1 = jnp.maximum(f1, 0.0) * mask_out                     # relu + border zero

            # conv2 (+ folded bn2); h1 never leaves registers/VMEM
            f2 = _conv3x3(h1.astype(MATMUL_DTYPE), w2_ref, b2_ref, b['Wp_out'], b['M_out'])

            # shortcut
            if b['has_sc']:
                wsc_ref, bsc_ref = r[4], r[5]
                sc = jnp.dot(wsc_ref[...], x_id.astype(MATMUL_DTYPE),
                             preferred_element_type=jnp.float32) + bsc_ref[...]
            else:
                sc = x_id                                            # identity

            h = jnp.maximum(f2 + sc, 0.0) * mask_out                 # (Cout, M_out) f32

        # ---- head: global average pool (lane reduction; border rows are zero) + linear --
        pooled = jnp.sum(h, axis=1, keepdims=True) * cfg['inv_hw']   # (C_last, 1) f32
        latent = jnp.dot(wproj_ref[...], pooled,
                         preferred_element_type=jnp.float32) + bproj_ref[...]   # (L, 1)
        out_ref[...] = latent.reshape(1, cfg['latent_dim'], 1)

    return kernel


# --------------------------------------------------------------------------- host-side constants

def _np_interior_mask(H, W):
    """(1, (H+2)*(W+2)) f32: 1 on the valid interior, 0 on the padded border."""
    Hp, Wp = H + 2, W + 2
    m = np.zeros((Hp, Wp), np.float32)
    m[1:H + 1, 1:W + 1] = 1.0
    return m.reshape(1, Hp * Wp)


def _np_stride2_select(H_in, W_in):
    """Per-image 0/1 matrix mapping the padded-flat input grid to the padded-flat
    stride-2 output grid (output border columns are all-zero)."""
    H_out, W_out = H_in // 2, W_in // 2
    Hp1, Wp1 = H_in + 2, W_in + 2
    Hp2, Wp2 = H_out + 2, W_out + 2
    sel = np.zeros((Hp1 * Wp1, Hp2 * Wp2), np.float32)
    for yo in range(H_out):
        for xo in range(W_out):
            sel[(2 * yo + 1) * Wp1 + (2 * xo + 1), (yo + 1) * Wp2 + (xo + 1)] = 1.0
    return sel


# --------------------------------------------------------------------------- weight packing

def _bn_fold(bn):
    gamma, beta, mean, var = bn
    scale = gamma / jnp.sqrt(var + BN_EPS)
    shift = beta - mean * scale
    return scale, shift.reshape(-1, 1).astype(jnp.float32)


def _pack_conv3x3(w_hwio, scale=None, cin_pad=None):
    """(3,3,Cin,Cout) HWIO -> (Cout, 9*Cin[_pad]) bf16 with BN scale folded in."""
    kh, kw, cin, cout = w_hwio.shape
    wt = jnp.transpose(w_hwio, (3, 0, 1, 2))                         # (Cout, ky, kx, Cin)
    if cin_pad is not None and cin_pad > cin:
        wt = jnp.pad(wt, ((0, 0), (0, 0), (0, 0), (0, cin_pad - cin)))
        cin = cin_pad
    w2d = wt.reshape(cout, kh * kw * cin)
    if scale is not None:
        w2d = w2d * scale[:, None]
    return w2d.astype(MATMUL_DTYPE)


# --------------------------------------------------------------------------- JAX wrapper

def image_encoder_forward(x_nchw, params, strides):
    """ImageEncoder forward: NCHW f32 input -> (N, latent_dim) f32 latents."""
    N, C_img, H, W = x_nchw.shape
    CINP = ((C_img + 7) // 8) * 8                                    # pad image channels to 8

    mask_keys, sel_keys = [], []

    def mask_id(hw):
        if hw not in mask_keys:
            mask_keys.append(hw)
        return mask_keys.index(hw)

    def sel_id(hw):
        if hw not in sel_keys:
            sel_keys.append(hw)
        return sel_keys.index(hw)

    weight_args = [_pack_conv3x3(params['stem_w'], None, CINP),
                   params['stem_b'].reshape(-1, 1).astype(jnp.float32)]
    stem_cfg = {'Wp': W + 2, 'M': (H + 2) * (W + 2), 'mask_idx': mask_id((H, W))}

    blocks_cfg = []
    Hc, Wc = H, W
    for p, s in zip(params['blocks'], strides):
        Ho, Wo = Hc // s, Wc // s
        s1, b1 = _bn_fold(p['bn1'])
        s2, b2 = _bn_fold(p['bn2'])
        weight_args += [_pack_conv3x3(p['conv1'], s1), b1,
                        _pack_conv3x3(p['conv2'], s2), b2]
        has_sc = 'conv_sc' in p
        if has_sc:
            ssc, bsc = _bn_fold(p['bn_sc'])
            weight_args += [(p['conv_sc'].T * ssc[:, None]).astype(MATMUL_DTYPE), bsc]
        blocks_cfg.append({
            'stride': s, 'has_sc': has_sc,
            'Wp_in': Wc + 2, 'M_in': (Hc + 2) * (Wc + 2),
            'Wp_out': Wo + 2, 'M_out': (Ho + 2) * (Wo + 2),
            'mask_out_idx': mask_id((Ho, Wo)),
            'sel_idx': sel_id((Hc, Wc)) if s == 2 else None,
        })
        Hc, Wc = Ho, Wo

    latent_dim = params['proj_w'].shape[1]
    weight_args += [params['proj_w'].T.astype(jnp.float32),           # (L, C_last) f32
                    params['proj_b'].reshape(-1, 1).astype(jnp.float32)]

    mask_args = [_np_interior_mask(h, w) for (h, w) in mask_keys]     # numpy constants
    sel_args = [_np_stride2_select(h, w) for (h, w) in sel_keys]

    cfg = {'stem': stem_cfg, 'blocks': blocks_cfg,
           'n_masks': len(mask_args), 'n_sels': len(sel_args),
           'inv_hw': 1.0 / float(Hc * Wc), 'latent_dim': latent_dim}

    # input layout: NCHW -> zero spatial pad -> channel-major, flat-spatial-on-lanes
    xp = jnp.pad(x_nchw.astype(jnp.float32),
                 ((0, 0), (0, CINP - C_img), (1, 1), (1, 1)))
    x_in = xp.reshape(N, CINP, (H + 2) * (W + 2))

    args = [x_in] + weight_args + mask_args + sel_args

    def full_spec(a):
        shape = tuple(a.shape)
        zeros = (0,) * len(shape)
        return pl.BlockSpec(shape, lambda n: zeros)                   # resident constant block

    in_specs = ([pl.BlockSpec((1, CINP, stem_cfg['M']), lambda n: (n, 0, 0))]
                + [full_spec(a) for a in weight_args + mask_args + sel_args])
    out_spec = pl.BlockSpec((1, latent_dim, 1), lambda n: (n, 0, 0))

    out = pl.pallas_call(
        _make_encoder_kernel(cfg),
        grid=(N,),                                                    # one image per step
        in_specs=in_specs,
        out_specs=out_spec,
        out_shape=jax.ShapeDtypeStruct((N, latent_dim, 1), jnp.float32),
        compiler_params=pltpu.CompilerParams(
            dimension_semantics=("parallel",)),                       # shards batch over TCs (v7x)
    )(*args)
    return out.reshape(N, latent_dim)


# --------------------------------------------------------------------------- pure-JAX reference

def reference_forward(x_nchw, params, strides):
    dn = ('NHWC', 'HWIO', 'NHWC')

    def bn(v, bnp):
        g, b, m, var = bnp
        return (v - m) / jnp.sqrt(var + BN_EPS) * g + b

    x = jnp.transpose(x_nchw, (0, 2, 3, 1)).astype(jnp.float32)
    h = lax.conv_general_dilated(x, params['stem_w'], (1, 1), ((1, 1), (1, 1)),
                                 dimension_numbers=dn) + params['stem_b']
    for p, s in zip(params['blocks'], strides):
        if 'conv_sc' in p:
            idn = lax.conv_general_dilated(
                h, p['conv_sc'].reshape(1, 1, *p['conv_sc'].shape), (s, s),
                ((0, 0), (0, 0)), dimension_numbers=dn)
            idn = bn(idn, p['bn_sc'])
        else:
            idn = h
        out = lax.conv_general_dilated(h, p['conv1'], (s, s), ((1, 1), (1, 1)),
                                       dimension_numbers=dn)
        out = jax.nn.relu(bn(out, p['bn1']))
        out = lax.conv_general_dilated(out, p['conv2'], (1, 1), ((1, 1), (1, 1)),
                                       dimension_numbers=dn)
        h = jax.nn.relu(bn(out, p['bn2']) + idn)
    pooled = h.mean(axis=(1, 2))
    return pooled @ params['proj_w'] + params['proj_b']


# --------------------------------------------------------------------------- params

def init_bn(key, c):
    k1, k2, k3, k4 = jax.random.split(key, 4)
    gamma = 1.0 + 0.1 * jax.random.normal(k1, (c,), jnp.float32)
    beta = 0.1 * jax.random.normal(k2, (c,), jnp.float32)
    mean = 0.1 * jax.random.normal(k3, (c,), jnp.float32)
    var = 1.0 + 0.1 * jax.random.uniform(k4, (c,), jnp.float32)
    return gamma, beta, mean, var


def init_params(key, base_channels=8, channel_mults=(1, 2), latent_dim=16):
    keys = iter(jax.random.split(key, 128))
    params = {}
    params['stem_w'] = jax.random.normal(next(keys), (3, 3, 3, base_channels),
                                         jnp.float32) / jnp.sqrt(27.0)
    params['stem_b'] = 0.1 * jax.random.normal(next(keys), (base_channels,), jnp.float32)

    blocks, strides = [], []
    ch = base_channels
    for i, mult in enumerate(channel_mults):
        out_ch = base_channels * mult
        stage_stride = 2 if i > 0 else 1
        for j in range(2):
            s = stage_stride if j == 0 else 1
            cin = ch if j == 0 else out_ch
            p = {}
            p['conv1'] = jax.random.normal(next(keys), (3, 3, cin, out_ch),
                                           jnp.float32) / jnp.sqrt(9.0 * cin)
            p['bn1'] = init_bn(next(keys), out_ch)
            p['conv2'] = jax.random.normal(next(keys), (3, 3, out_ch, out_ch),
                                           jnp.float32) / jnp.sqrt(9.0 * out_ch)
            p['bn2'] = init_bn(next(keys), out_ch)
            if s != 1 or cin != out_ch:
                p['conv_sc'] = jax.random.normal(next(keys), (cin, out_ch),
                                                 jnp.float32) / jnp.sqrt(float(cin))
                p['bn_sc'] = init_bn(next(keys), out_ch)
            blocks.append(p)
            strides.append(s)
        ch = out_ch
    params['blocks'] = blocks
    params['proj_w'] = jax.random.normal(next(keys), (ch, latent_dim),
                                         jnp.float32) / jnp.sqrt(float(ch))
    params['proj_b'] = 0.1 * jax.random.normal(next(keys), (latent_dim,), jnp.float32)
    return params, tuple(strides)


# --------------------------------------------------------------------------- main

if __name__ == "__main__":
    key = jax.random.PRNGKey(0)
    kp, kx = jax.random.split(key)

    params, strides = init_params(kp, base_channels=8, channel_mults=(1, 2), latent_dim=16)
    x = jax.random.normal(kx, (2, 3, 16, 16), jnp.float32)           # PyTorch-style NCHW

    fwd = jax.jit(image_encoder_forward, static_argnums=2)
    out = jax.block_until_ready(fwd(x, params, strides))

    assert out.shape == (2, 16), out.shape
    assert bool(jnp.all(jnp.isfinite(out)))

    # Correctness check against a pure-JAX (eval-mode BN) reference; tolerance accounts
    # for bf16 MXU conv operands / folded-BN weight rounding in the Pallas path.
    ref = jax.block_until_ready(reference_forward(x, params, strides))
    max_err = float(jnp.max(jnp.abs(out - ref)))
    assert max_err < 1e-1, f"max |pallas - reference| = {max_err}"

    print("KERNEL_OK")
</pallas_src>

<mosaic_0001>
module attributes {stable_mosaic.version = 11 : i64} {
  func.func @kernel(%arg0: i32, %arg1: memref<1x8x324xf32, #tpu.memory_space<vmem>>, %arg2: memref<8x72xbf16, #tpu.memory_space<vmem>>, %arg3: memref<8x1xf32, #tpu.memory_space<vmem>>, %arg4: memref<8x72xbf16, #tpu.memory_space<vmem>>, %arg5: memref<8x1xf32, #tpu.memory_space<vmem>>, %arg6: memref<8x72xbf16, #tpu.memory_space<vmem>>, %arg7: memref<8x1xf32, #tpu.memory_space<vmem>>, %arg8: memref<8x72xbf16, #tpu.memory_space<vmem>>, %arg9: memref<8x1xf32, #tpu.memory_space<vmem>>, %arg10: memref<8x72xbf16, #tpu.memory_space<vmem>>, %arg11: memref<8x1xf32, #tpu.memory_space<vmem>>, %arg12: memref<16x72xbf16, #tpu.memory_space<vmem>>, %arg13: memref<16x1xf32, #tpu.memory_space<vmem>>, %arg14: memref<16x144xbf16, #tpu.memory_space<vmem>>, %arg15: memref<16x1xf32, #tpu.memory_space<vmem>>, %arg16: memref<16x8xbf16, #tpu.memory_space<vmem>>, %arg17: memref<16x1xf32, #tpu.memory_space<vmem>>, %arg18: memref<16x144xbf16, #tpu.memory_space<vmem>>, %arg19: memref<16x1xf32, #tpu.memory_space<vmem>>, %arg20: memref<16x144xbf16, #tpu.memory_space<vmem>>, %arg21: memref<16x1xf32, #tpu.memory_space<vmem>>, %arg22: memref<16x16xf32, #tpu.memory_space<vmem>>, %arg23: memref<16x1xf32, #tpu.memory_space<vmem>>, %arg24: memref<1x324xf32, #tpu.memory_space<vmem>>, %arg25: memref<1x100xf32, #tpu.memory_space<vmem>>, %arg26: memref<324x100xf32, #tpu.memory_space<vmem>>, %arg27: memref<1x16x1xf32, #tpu.memory_space<vmem>>) attributes {dimension_semantics = [#tpu.dimension_semantics<parallel>], iteration_bounds = array<i64: 2>, scalar_prefetch = 0 : i64, scratch_operands = 0 : i64, tpu.core_type = #tpu.core_type<tc>, window_params = [{transform_indices = @transform_0, window_bounds = array<i64: 1, 8, 324>}, {pipeline_mode = #tpu.pipeline_mode<synchronous>, transform_indices = @transform_1, window_bounds = array<i64: 8, 72>}, {pipeline_mode = #tpu.pipeline_mode<synchronous>, transform_indices = @transform_2, window_bounds = array<i64: 8, 1>}, {pipeline_mode = #tpu.pipeline_mode<synchronous>, transform_indices = @transform_3, window_bounds = array<i64: 8, 72>}, {pipeline_mode = #tpu.pipeline_mode<synchronous>, transform_indices = @transform_4, window_bounds = array<i64: 8, 1>}, {pipeline_mode = #tpu.pipeline_mode<synchronous>, transform_indices = @transform_5, window_bounds = array<i64: 8, 72>}, {pipeline_mode = #tpu.pipeline_mode<synchronous>, transform_indices = @transform_6, window_bounds = array<i64: 8, 1>}, {pipeline_mode = #tpu.pipeline_mode<synchronous>, transform_indices = @transform_7, window_bounds = array<i64: 8, 72>}, {pipeline_mode = #tpu.pipeline_mode<synchronous>, transform_indices = @transform_8, window_bounds = array<i64: 8, 1>}, {pipeline_mode = #tpu.pipeline_mode<synchronous>, transform_indices = @transform_9, window_bounds = array<i64: 8, 72>}, {pipeline_mode = #tpu.pipeline_mode<synchronous>, transform_indices = @transform_10, window_bounds = array<i64: 8, 1>}, {pipeline_mode = #tpu.pipeline_mode<synchronous>, transform_indices = @transform_11, window_bounds = array<i64: 16, 72>}, {pipeline_mode = #tpu.pipeline_mode<synchronous>, transform_indices = @transform_12, window_bounds = array<i64: 16, 1>}, {pipeline_mode = #tpu.pipeline_mode<synchronous>, transform_indices = @transform_13, window_bounds = array<i64: 16, 144>}, {pipeline_mode = #tpu.pipeline_mode<synchronous>, transform_indices = @transform_14, window_bounds = array<i64: 16, 1>}, {pipeline_mode = #tpu.pipeline_mode<synchronous>, transform_indices = @transform_15, window_bounds = array<i64: 16, 8>}, {pipeline_mode = #tpu.pipeline_mode<synchronous>, transform_indices = @transform_16, window_bounds = array<i64: 16, 1>}, {pipeline_mode = #tpu.pipeline_mode<synchronous>, transform_indices = @transform_17, window_bounds = array<i64: 16, 144>}, {pipeline_mode = #tpu.pipeline_mode<synchronous>, transform_indices = @transform_18, window_bounds = array<i64: 16, 1>}, {pipeline_mode = #tpu.pipeline_mode<synchronous>, transform_indices = @transform_19, window_bounds = array<i64: 16, 144>}, {pipeline_mode = #tpu.pipeline_mode<synchronous>, transform_indices = @transform_20, window_bounds = array<i64: 16, 1>}, {pipeline_mode = #tpu.pipeline_mode<synchronous>, transform_indices = @transform_21, window_bounds = array<i64: 16, 16>}, {pipeline_mode = #tpu.pipeline_mode<synchronous>, transform_indices = @transform_22, window_bounds = array<i64: 16, 1>}, {pipeline_mode = #tpu.pipeline_mode<synchronous>, transform_indices = @transform_23, window_bounds = array<i64: 1, 324>}, {pipeline_mode = #tpu.pipeline_mode<synchronous>, transform_indices = @transform_24, window_bounds = array<i64: 1, 100>}, {pipeline_mode = #tpu.pipeline_mode<synchronous>, transform_indices = @transform_25, window_bounds = array<i64: 324, 100>}, {transform_indices = @transform_26, window_bounds = array<i64: 1, 16, 1>}]} {
    %c0 = arith.constant 0 : index
    %c0_0 = arith.constant 0 : index
    %c0_1 = arith.constant 0 : index
    %0 = vector.load %arg1[%c0, %c0_0, %c0_1] : memref<1x8x324xf32, #tpu.memory_space<vmem>>, vector<1x8x324xf32>
    %1 = vector.shape_cast %0 : vector<1x8x324xf32> to vector<8x324xf32>
    %2 = arith.truncf %1 : vector<8x324xf32> to vector<8x324xbf16>
    %cst = arith.constant 0.000000e+00 : bf16
    %3 = vector.broadcast %cst : bf16 to vector<8x19xbf16>
    %4 = tpu.concatenate %3, %2, %3 in 1 : vector<8x19xbf16>, vector<8x324xbf16>, vector<8x19xbf16> -> vector<8x362xbf16>
    %5 = vector.extract_strided_slice %4 {offsets = [0, 0], sizes = [8, 324], strides = [1, 1]} : vector<8x362xbf16> to vector<8x324xbf16>
    %6 = vector.extract_strided_slice %4 {offsets = [0, 1], sizes = [8, 324], strides = [1, 1]} : vector<8x362xbf16> to vector<8x324xbf16>
    %7 = vector.extract_strided_slice %4 {offsets = [0, 2], sizes = [8, 324], strides = [1, 1]} : vector<8x362xbf16> to vector<8x324xbf16>
    %8 = vector.extract_strided_slice %4 {offsets = [0, 18], sizes = [8, 324], strides = [1, 1]} : vector<8x362xbf16> to vector<8x324xbf16>
    %9 = vector.extract_strided_slice %4 {offsets = [0, 19], sizes = [8, 324], strides = [1, 1]} : vector<8x362xbf16> to vector<8x324xbf16>
    %10 = vector.extract_strided_slice %4 {offsets = [0, 20], sizes = [8, 324], strides = [1, 1]} : vector<8x362xbf16> to vector<8x324xbf16>
    %11 = vector.extract_strided_slice %4 {offsets = [0, 36], sizes = [8, 324], strides = [1, 1]} : vector<8x362xbf16> to vector<8x324xbf16>
    %12 = vector.extract_strided_slice %4 {offsets = [0, 37], sizes = [8, 324], strides = [1, 1]} : vector<8x362xbf16> to vector<8x324xbf16>
    %13 = vector.extract_strided_slice %4 {offsets = [0, 38], sizes = [8, 324], strides = [1, 1]} : vector<8x362xbf16> to vector<8x324xbf16>
    %14 = tpu.concatenate %5, %6, %7, %8, %9, %10, %11, %12, %13 in 0 : vector<8x324xbf16>, vector<8x324xbf16>, vector<8x324xbf16>, vector<8x324xbf16>, vector<8x324xbf16>, vector<8x324xbf16>, vector<8x324xbf16>, vector<8x324xbf16>, vector<8x324xbf16> -> vector<72x324xbf16>
    %c0_2 = arith.constant 0 : index
    %c0_3 = arith.constant 0 : index
    %15 = vector.load %arg2[%c0_2, %c0_3] : memref<8x72xbf16, #tpu.memory_space<vmem>>, vector<8x72xbf16>
    %cst_4 = arith.constant dense<0.000000e+00> : vector<8x324xf32>
    %16 = tpu.matmul %15, %14, %cst_4 {dimension_numbers = #tpu.dot_dimension_numbers<[1], [0], [0], [1], [0, 0, 1, 1], [], []>} : vector<8x72xbf16>, vector<72x324xbf16>, vector<8x324xf32> -> vector<8x324xf32>
    %c0_5 = arith.constant 0 : index
    %c0_6 = arith.constant 0 : index
    %17 = vector.load %arg3[%c0_5, %c0_6] : memref<8x1xf32, #tpu.memory_space<vmem>>, vector<8x1xf32>
    %18 = vector.broadcast %17 : vector<8x1xf32> to vector<8x324xf32>
    %19 = arith.addf %16, %18 : vector<8x324xf32>
    %c0_7 = arith.constant 0 : index
    %c0_8 = arith.constant 0 : index
    %20 = vector.load %arg24[%c0_7, %c0_8] : memref<1x324xf32, #tpu.memory_space<vmem>>, vector<1x324xf32>
    %21 = vector.broadcast %20 : vector<1x324xf32> to vector<8x324xf32>
    %22 = arith.mulf %19, %21 : vector<8x324xf32>
    %c0_9 = arith.constant 0 : index
    %c0_10 = arith.constant 0 : index
    %23 = vector.load %arg24[%c0_9, %c0_10] : memref<1x324xf32, #tpu.memory_space<vmem>>, vector<1x324xf32>
    %24 = arith.truncf %22 : vector<8x324xf32> to vector<8x324xbf16>
    %cst_11 = arith.constant 0.000000e+00 : bf16
    %25 = vector.broadcast %cst_11 : bf16 to vector<8x19xbf16>
    %26 = tpu.concatenate %25, %24, %25 in 1 : vector<8x19xbf16>, vector<8x324xbf16>, vector<8x19xbf16> -> vector<8x362xbf16>
    %27 = vector.extract_strided_slice %26 {offsets = [0, 0], sizes = [8, 324], strides = [1, 1]} : vector<8x362xbf16> to vector<8x324xbf16>
    %28 = vector.extract_strided_slice %26 {offsets = [0, 1], sizes = [8, 324], strides = [1, 1]} : vector<8x362xbf16> to vector<8x324xbf16>
    %29 = vector.extract_strided_slice %26 {offsets = [0, 2], sizes = [8, 324], strides = [1, 1]} : vector<8x362xbf16> to vector<8x324xbf16>
    %30 = vector.extract_strided_slice %26 {offsets = [0, 18], sizes = [8, 324], strides = [1, 1]} : vector<8x362xbf16> to vector<8x324xbf16>
    %31 = vector.extract_strided_slice %26 {offsets = [0, 19], sizes = [8, 324], strides = [1, 1]} : vector<8x362xbf16> to vector<8x324xbf16>
    %32 = vector.extract_strided_slice %26 {offsets = [0, 20], sizes = [8, 324], strides = [1, 1]} : vector<8x362xbf16> to vector<8x324xbf16>
    %33 = vector.extract_strided_slice %26 {offsets = [0, 36], sizes = [8, 324], strides = [1, 1]} : vector<8x362xbf16> to vector<8x324xbf16>
    %34 = vector.extract_strided_slice %26 {offsets = [0, 37], sizes = [8, 324], strides = [1, 1]} : vector<8x362xbf16> to vector<8x324xbf16>
    %35 = vector.extract_strided_slice %26 {offsets = [0, 38], sizes = [8, 324], strides = [1, 1]} : vector<8x362xbf16> to vector<8x324xbf16>
    %36 = tpu.concatenate %27, %28, %29, %30, %31, %32, %33, %34, %35 in 0 : vector<8x324xbf16>, vector<8x324xbf16>, vector<8x324xbf16>, vector<8x324xbf16>, vector<8x324xbf16>, vector<8x324xbf16>, vector<8x324xbf16>, vector<8x324xbf16>, vector<8x324xbf16> -> vector<72x324xbf16>
    %c0_12 = arith.constant 0 : index
    %c0_13 = arith.constant 0 : index
    %37 = vector.load %arg4[%c0_12, %c0_13] : memref<8x72xbf16, #tpu.memory_space<vmem>>, vector<8x72xbf16>
    %cst_14 = arith.constant dense<0.000000e+00> : vector<8x324xf32>
    %38 = tpu.matmul %37, %36, %cst_14 {dimension_numbers = #tpu.dot_dimension_numbers<[1], [0], [0], [1], [0, 0, 1, 1], [], []>} : vector<8x72xbf16>, vector<72x324xbf16>, vector<8x324xf32> -> vector<8x324xf32>
    %c0_15 = arith.constant 0 : index
    %c0_16 = arith.constant 0 : index
    %39 = vector.load %arg5[%c0_15, %c0_16] : memref<8x1xf32, #tpu.memory_space<vmem>>, vector<8x1xf32>
    %40 = vector.broadcast %39 : vector<8x1xf32> to vector<8x324xf32>
    %41 = arith.addf %38, %40 : vector<8x324xf32>
    %cst_17 = arith.constant 0.000000e+00 : f32
    %42 = vector.broadcast %cst_17 : f32 to vector<8x324xf32>
    %43 = arith.maximumf %41, %42 : vector<8x324xf32>
    %44 = vector.broadcast %23 : vector<1x324xf32> to vector<8x324xf32>
    %45 = arith.mulf %43, %44 : vector<8x324xf32>
    %46 = arith.truncf %45 : vector<8x324xf32> to vector<8x324xbf16>
    %cst_18 = arith.constant 0.000000e+00 : bf16
    %47 = vector.broadcast %cst_18 : bf16 to vector<8x19xbf16>
    %48 = tpu.concatenate %47, %46, %47 in 1 : vector<8x19xbf16>, vector<8x324xbf16>, vector<8x19xbf16> -> vector<8x362xbf16>
    %49 = vector.extract_strided_slice %48 {offsets = [0, 0], sizes = [8, 324], strides = [1, 1]} : vector<8x362xbf16> to vector<8x324xbf16>
    %50 = vector.extract_strided_slice %48 {offsets = [0, 1], sizes = [8, 324], strides = [1, 1]} : vector<8x362xbf16> to vector<8x324xbf16>
    %51 = vector.extract_strided_slice %48 {offsets = [0, 2], sizes = [8, 324], strides = [1, 1]} : vector<8x362xbf16> to vector<8x324xbf16>
    %52 = vector.extract_strided_slice %48 {offsets = [0, 18], sizes = [8, 324], strides = [1, 1]} : vector<8x362xbf16> to vector<8x324xbf16>
    %53 = vector.extract_strided_slice %48 {offsets = [0, 19], sizes = [8, 324], strides = [1, 1]} : vector<8x362xbf16> to vector<8x324xbf16>
    %54 = vector.extract_strided_slice %48 {offsets = [0, 20], sizes = [8, 324], strides = [1, 1]} : vector<8x362xbf16> to vector<8x324xbf16>
    %55 = vector.extract_strided_slice %48 {offsets = [0, 36], sizes = [8, 324], strides = [1, 1]} : vector<8x362xbf16> to vector<8x324xbf16>
    %56 = vector.extract_strided_slice %48 {offsets = [0, 37], sizes = [8, 324], strides = [1, 1]} : vector<8x362xbf16> to vector<8x324xbf16>
    %57 = vector.extract_strided_slice %48 {offsets = [0, 38], sizes = [8, 324], strides = [1, 1]} : vector<8x362xbf16> to vector<8x324xbf16>
    %58 = tpu.concatenate %49, %50, %51, %52, %53, %54, %55, %56, %57 in 0 : vector<8x324xbf16>, vector<8x324xbf16>, vector<8x324xbf16>, vector<8x324xbf16>, vector<8x324xbf16>, vector<8x324xbf16>, vector<8x324xbf16>, vector<8x324xbf16>, vector<8x324xbf16> -> vector<72x324xbf16>
    %c0_19 = arith.constant 0 : index
    %c0_20 = arith.constant 0 : index
    %59 = vector.load %arg6[%c0_19, %c0_20] : memref<8x72xbf16, #tpu.memory_space<vmem>>, vector<8x72xbf16>
    %cst_21 = arith.constant dense<0.000000e+00> : vector<8x324xf32>
    %60 = tpu.matmul %59, %58, %cst_21 {dimension_numbers = #tpu.dot_dimension_numbers<[1], [0], [0], [1], [0, 0, 1, 1], [], []>} : vector<8x72xbf16>, vector<72x324xbf16>, vector<8x324xf32> -> vector<8x324xf32>
    %c0_22 = arith.constant 0 : index
    %c0_23 = arith.constant 0 : index
    %61 = vector.load %arg7[%c0_22, %c0_23] : memref<8x1xf32, #tpu.memory_space<vmem>>, vector<8x1xf32>
    %62 = vector.broadcast %61 : vector<8x1xf32> to vector<8x324xf32>
    %63 = arith.addf %60, %62 : vector<8x324xf32>
    %64 = arith.addf %63, %22 : vector<8x324xf32>
    %cst_24 = arith.constant 0.000000e+00 : f32
    %65 = vector.broadcast %cst_24 : f32 to vector<8x324xf32>
    %66 = arith.maximumf %64, %65 : vector<8x324xf32>
    %67 = vector.broadcast %23 : vector<1x324xf32> to vector<8x324xf32>
    %68 = arith.mulf %66, %67 : vector<8x324xf32>
    %c0_25 = arith.constant 0 : index
    %c0_26 = arith.constant 0 : index
    %69 = vector.load %arg24[%c0_25, %c0_26] : memref<1x324xf32, #tpu.memory_space<vmem>>, vector<1x324xf32>
    %70 = arith.truncf %68 : vector<8x324xf32> to vector<8x324xbf16>
    %cst_27 = arith.constant 0.000000e+00 : bf16
    %71 = vector.broadcast %cst_27 : bf16 to vector<8x19xbf16>
    %72 = tpu.concatenate %71, %70, %71 in 1 : vector<8x19xbf16>, vector<8x324xbf16>, vector<8x19xbf16> -> vector<8x362xbf16>
    %73 = vector.extract_strided_slice %72 {offsets = [0, 0], sizes = [8, 324], strides = [1, 1]} : vector<8x362xbf16> to vector<8x324xbf16>
    %74 = vector.extract_strided_slice %72 {offsets = [0, 1], sizes = [8, 324], strides = [1, 1]} : vector<8x362xbf16> to vector<8x324xbf16>
    %75 = vector.extract_strided_slice %72 {offsets = [0, 2], sizes = [8, 324], strides = [1, 1]} : vector<8x362xbf16> to vector<8x324xbf16>
    %76 = vector.extract_strided_slice %72 {offsets = [0, 18], sizes = [8, 324], strides = [1, 1]} : vector<8x362xbf16> to vector<8x324xbf16>
    %77 = vector.extract_strided_slice %72 {offsets = [0, 19], sizes = [8, 324], strides = [1, 1]} : vector<8x362xbf16> to vector<8x324xbf16>
    %78 = vector.extract_strided_slice %72 {offsets = [0, 20], sizes = [8, 324], strides = [1, 1]} : vector<8x362xbf16> to vector<8x324xbf16>
    %79 = vector.extract_strided_slice %72 {offsets = [0, 36], sizes = [8, 324], strides = [1, 1]} : vector<8x362xbf16> to vector<8x324xbf16>
    %80 = vector.extract_strided_slice %72 {offsets = [0, 37], sizes = [8, 324], strides = [1, 1]} : vector<8x362xbf16> to vector<8x324xbf16>
    %81 = vector.extract_strided_slice %72 {offsets = [0, 38], sizes = [8, 324], strides = [1, 1]} : vector<8x362xbf16> to vector<8x324xbf16>
    %82 = tpu.concatenate %73, %74, %75, %76, %77, %78, %79, %80, %81 in 0 : vector<8x324xbf16>, vector<8x324xbf16>, vector<8x324xbf16>, vector<8x324xbf16>, vector<8x324xbf16>, vector<8x324xbf16>, vector<8x324xbf16>, vector<8x324xbf16>, vector<8x324xbf16> -> vector<72x324xbf16>
    %c0_28 = arith.constant 0 : index
    %c0_29 = arith.constant 0 : index
    %83 = vector.load %arg8[%c0_28, %c0_29] : memref<8x72xbf16, #tpu.memory_space<vmem>>, vector<8x72xbf16>
    %cst_30 = arith.constant dense<0.000000e+00> : vector<8x324xf32>
    %84 = tpu.matmul %83, %82, %cst_30 {dimension_numbers = #tpu.dot_dimension_numbers<[1], [0], [0], [1], [0, 0, 1, 1], [], []>} : vector<8x72xbf16>, vector<72x324xbf16>, vector<8x324xf32> -> vector<8x324xf32>
    %c0_31 = arith.constant 0 : index
    %c0_32 = arith.constant 0 : index
    %85 = vector.load %arg9[%c0_31, %c0_32] : memref<8x1xf32, #tpu.memory_space<vmem>>, vector<8x1xf32>
    %86 = vector.broadcast %85 : vector<8x1xf32> to vector<8x324xf32>
    %87 = arith.addf %84, %86 : vector<8x324xf32>
    %cst_33 = arith.constant 0.000000e+00 : f32
    %88 = vector.broadcast %cst_33 : f32 to vector<8x324xf32>
    %89 = arith.maximumf %87, %88 : vector<8x324xf32>
    %90 = vector.broadcast %69 : vector<1x324xf32> to vector<8x324xf32>
    %91 = arith.mulf %89, %90 : vector<8x324xf32>
    %92 = arith.truncf %91 : vector<8x324xf32> to vector<8x324xbf16>
    %cst_34 = arith.constant 0.000000e+00 : bf16
    %93 = vector.broadcast %cst_34 : bf16 to vector<8x19xbf16>
    %94 = tpu.concatenate %93, %92, %93 in 1 : vector<8x19xbf16>, vector<8x324xbf16>, vector<8x19xbf16> -> vector<8x362xbf16>
    %95 = vector.extract_strided_slice %94 {offsets = [0, 0], sizes = [8, 324], strides = [1, 1]} : vector<8x362xbf16> to vector<8x324xbf16>
    %96 = vector.extract_strided_slice %94 {offsets = [0, 1], sizes = [8, 324], strides = [1, 1]} : vector<8x362xbf16> to vector<8x324xbf16>
    %97 = vector.extract_strided_slice %94 {offsets = [0, 2], sizes = [8, 324], strides = [1, 1]} : vector<8x362xbf16> to vector<8x324xbf16>
    %98 = vector.extract_strided_slice %94 {offsets = [0, 18], sizes = [8, 324], strides = [1, 1]} : vector<8x362xbf16> to vector<8x324xbf16>
    %99 = vector.extract_strided_slice %94 {offsets = [0, 19], sizes = [8, 324], strides = [1, 1]} : vector<8x362xbf16> to vector<8x324xbf16>
    %100 = vector.extract_strided_slice %94 {offsets = [0, 20], sizes = [8, 324], strides = [1, 1]} : vector<8x362xbf16> to vector<8x324xbf16>
    %101 = vector.extract_strided_slice %94 {offsets = [0, 36], sizes = [8, 324], strides = [1, 1]} : vector<8x362xbf16> to vector<8x324xbf16>
    %102 = vector.extract_strided_slice %94 {offsets = [0, 37], sizes = [8, 324], strides = [1, 1]} : vector<8x362xbf16> to vector<8x324xbf16>
    %103 = vector.extract_strided_slice %94 {offsets = [0, 38], sizes = [8, 324], strides = [1, 1]} : vector<8x362xbf16> to vector<8x324xbf16>
    %104 = tpu.concatenate %95, %96, %97, %98, %99, %100, %101, %102, %103 in 0 : vector<8x324xbf16>, vector<8x324xbf16>, vector<8x324xbf16>, vector<8x324xbf16>, vector<8x324xbf16>, vector<8x324xbf16>, vector<8x324xbf16>, vector<8x324xbf16>, vector<8x324xbf16> -> vector<72x324xbf16>
    %c0_35 = arith.constant 0 : index
    %c0_36 = arith.constant 0 : index
    %105 = vector.load %arg10[%c0_35, %c0_36] : memref<8x72xbf16, #tpu.memory_space<vmem>>, vector<8x72xbf16>
    %cst_37 = arith.constant dense<0.000000e+00> : vector<8x324xf32>
    %106 = tpu.matmul %105, %104, %cst_37 {dimension_numbers = #tpu.dot_dimension_numbers<[1], [0], [0], [1], [0, 0, 1, 1], [], []>} : vector<8x72xbf16>, vector<72x324xbf16>, vector<8x324xf32> -> vector<8x324xf32>
    %c0_38 = arith.constant 0 : index
    %c0_39 = arith.constant 0 : index
    %107 = vector.load %arg11[%c0_38, %c0_39] : memref<8x1xf32, #tpu.memory_space<vmem>>, vector<8x1xf32>
    %108 = vector.broadcast %107 : vector<8x1xf32> to vector<8x324xf32>
    %109 = arith.addf %106, %108 : vector<8x324xf32>
    %110 = arith.addf %109, %68 : vector<8x324xf32>
    %cst_40 = arith.constant 0.000000e+00 : f32
    %111 = vector.broadcast %cst_40 : f32 to vector<8x324xf32>
    %112 = arith.maximumf %110, %111 : vector<8x324xf32>
    %113 = vector.broadcast %69 : vector<1x324xf32> to vector<8x324xf32>
    %114 = arith.mulf %112, %113 : vector<8x324xf32>
    %c0_41 = arith.constant 0 : index
    %c0_42 = arith.constant 0 : index
    %115 = vector.load %arg25[%c0_41, %c0_42] : memref<1x100xf32, #tpu.memory_space<vmem>>, vector<1x100xf32>
    %116 = arith.truncf %114 : vector<8x324xf32> to vector<8x324xbf16>
    %cst_43 = arith.constant 0.000000e+00 : bf16
    %117 = vector.broadcast %cst_43 : bf16 to vector<8x19xbf16>
    %118 = tpu.concatenate %117, %116, %117 in 1 : vector<8x19xbf16>, vector<8x324xbf16>, vector<8x19xbf16> -> vector<8x362xbf16>
    %119 = vector.extract_strided_slice %118 {offsets = [0, 0], sizes = [8, 324], strides = [1, 1]} : vector<8x362xbf16> to vector<8x324xbf16>
    %120 = vector.extract_strided_slice %118 {offsets = [0, 1], sizes = [8, 324], strides = [1, 1]} : vector<8x362xbf16> to vector<8x324xbf16>
    %121 = vector.extract_strided_slice %118 {offsets = [0, 2], sizes = [8, 324], strides = [1, 1]} : vector<8x362xbf16> to vector<8x324xbf16>
    %122 = vector.extract_strided_slice %118 {offsets = [0, 18], sizes = [8, 324], strides = [1, 1]} : vector<8x362xbf16> to vector<8x324xbf16>
    %123 = vector.extract_strided_slice %118 {offsets = [0, 19], sizes = [8, 324], strides = [1, 1]} : vector<8x362xbf16> to vector<8x324xbf16>
    %124 = vector.extract_strided_slice %118 {offsets = [0, 20], sizes = [8, 324], strides = [1, 1]} : vector<8x362xbf16> to vector<8x324xbf16>
    %125 = vector.extract_strided_slice %118 {offsets = [0, 36], sizes = [8, 324], strides = [1, 1]} : vector<8x362xbf16> to vector<8x324xbf16>
    %126 = vector.extract_strided_slice %118 {offsets = [0, 37], sizes = [8, 324], strides = [1, 1]} : vector<8x362xbf16> to vector<8x324xbf16>
    %127 = vector.extract_strided_slice %118 {offsets = [0, 38], sizes = [8, 324], strides = [1, 1]} : vector<8x362xbf16> to vector<8x324xbf16>
    %128 = tpu.concatenate %119, %120, %121, %122, %123, %124, %125, %126, %127 in 0 : vector<8x324xbf16>, vector<8x324xbf16>, vector<8x324xbf16>, vector<8x324xbf16>, vector<8x324xbf16>, vector<8x324xbf16>, vector<8x324xbf16>, vector<8x324xbf16>, vector<8x324xbf16> -> vector<72x324xbf16>
    %c0_44 = arith.constant 0 : index
    %c0_45 = arith.constant 0 : index
    %129 = vector.load %arg12[%c0_44, %c0_45] : memref<16x72xbf16, #tpu.memory_space<vmem>>, vector<16x72xbf16>
    %cst_46 = arith.constant dense<0.000000e+00> : vector<16x324xf32>
    %130 = tpu.matmul %129, %128, %cst_46 {dimension_numbers = #tpu.dot_dimension_numbers<[1], [0], [0], [1], [0, 0, 1, 1], [], []>} : vector<16x72xbf16>, vector<72x324xbf16>, vector<16x324xf32> -> vector<16x324xf32>
    %c0_47 = arith.constant 0 : index
    %c0_48 = arith.constant 0 : index
    %131 = vector.load %arg13[%c0_47, %c0_48] : memref<16x1xf32, #tpu.memory_space<vmem>>, vector<16x1xf32>
    %132 = vector.broadcast %131 : vector<16x1xf32> to vector<16x324xf32>
    %133 = arith.addf %130, %132 : vector<16x324xf32>
    %c0_49 = arith.constant 0 : index
    %c0_50 = arith.constant 0 : index
    %134 = vector.load %arg26[%c0_49, %c0_50] : memref<324x100xf32, #tpu.memory_space<vmem>>, vector<324x100xf32>
    %cst_51 = arith.constant dense<0.000000e+00> : vector<16x100xf32>
    %135 = tpu.matmul %133, %134, %cst_51 {dimension_numbers = #tpu.dot_dimension_numbers<[1], [0], [0], [1], [0, 0, 1, 1], [], []>} : vector<16x324xf32>, vector<324x100xf32>, vector<16x100xf32> -> vector<16x100xf32>
    %cst_52 = arith.constant dense<0.000000e+00> : vector<8x100xf32>
    %136 = tpu.matmul %114, %134, %cst_52 {dimension_numbers = #tpu.dot_dimension_numbers<[1], [0], [0], [1], [0, 0, 1, 1], [], []>} : vector<8x324xf32>, vector<324x100xf32>, vector<8x100xf32> -> vector<8x100xf32>
    %cst_53 = arith.constant 0.000000e+00 : f32
    %137 = vector.broadcast %cst_53 : f32 to vector<16x100xf32>
    %138 = arith.maximumf %135, %137 : vector<16x100xf32>
    %139 = vector.broadcast %115 : vector<1x100xf32> to vector<16x100xf32>
    %140 = arith.mulf %138, %139 : vector<16x100xf32>
    %141 = arith.truncf %140 : vector<16x100xf32> to vector<16x100xbf16>
    %cst_54 = arith.constant 0.000000e+00 : bf16
    %142 = vector.broadcast %cst_54 : bf16 to vector<16x11xbf16>
    %143 = tpu.concatenate %142, %141, %142 in 1 : vector<16x11xbf16>, vector<16x100xbf16>, vector<16x11xbf16> -> vector<16x122xbf16>
    %144 = vector.extract_strided_slice %143 {offsets = [0, 0], sizes = [16, 100], strides = [1, 1]} : vector<16x122xbf16> to vector<16x100xbf16>
    %145 = vector.extract_strided_slice %143 {offsets = [0, 1], sizes = [16, 100], strides = [1, 1]} : vector<16x122xbf16> to vector<16x100xbf16>
    %146 = vector.extract_strided_slice %143 {offsets = [0, 2], sizes = [16, 100], strides = [1, 1]} : vector<16x122xbf16> to vector<16x100xbf16>
    %147 = vector.extract_strided_slice %143 {offsets = [0, 10], sizes = [16, 100], strides = [1, 1]} : vector<16x122xbf16> to vector<16x100xbf16>
    %148 = vector.extract_strided_slice %143 {offsets = [0, 11], sizes = [16, 100], strides = [1, 1]} : vector<16x122xbf16> to vector<16x100xbf16>
    %149 = vector.extract_strided_slice %143 {offsets = [0, 12], sizes = [16, 100], strides = [1, 1]} : vector<16x122xbf16> to vector<16x100xbf16>
    %150 = vector.extract_strided_slice %143 {offsets = [0, 20], sizes = [16, 100], strides = [1, 1]} : vector<16x122xbf16> to vector<16x100xbf16>
    %151 = vector.extract_strided_slice %143 {offsets = [0, 21], sizes = [16, 100], strides = [1, 1]} : vector<16x122xbf16> to vector<16x100xbf16>
    %152 = vector.extract_strided_slice %143 {offsets = [0, 22], sizes = [16, 100], strides = [1, 1]} : vector<16x122xbf16> to vector<16x100xbf16>
    %153 = tpu.concatenate %144, %145, %146, %147, %148, %149, %150, %151, %152 in 0 : vector<16x100xbf16>, vector<16x100xbf16>, vector<16x100xbf16>, vector<16x100xbf16>, vector<16x100xbf16>, vector<16x100xbf16>, vector<16x100xbf16>, vector<16x100xbf16>, vector<16x100xbf16> -> vector<144x100xbf16>
    %c0_55 = arith.constant 0 : index
    %c0_56 = arith.constant 0 : index
    %154 = vector.load %arg14[%c0_55, %c0_56] : memref<16x144xbf16, #tpu.memory_space<vmem>>, vector<16x144xbf16>
    %cst_57 = arith.constant dense<0.000000e+00> : vector<16x100xf32>
    %155 = tpu.matmul %154, %153, %cst_57 {dimension_numbers = #tpu.dot_dimension_numbers<[1], [0], [0], [1], [0, 0, 1, 1], [], []>} : vector<16x144xbf16>, vector<144x100xbf16>, vector<16x100xf32> -> vector<16x100xf32>
    %c0_58 = arith.constant 0 : index
    %c0_59 = arith.constant 0 : index
    %156 = vector.load %arg15[%c0_58, %c0_59] : memref<16x1xf32, #tpu.memory_space<vmem>>, vector<16x1xf32>
    %157 = vector.broadcast %156 : vector<16x1xf32> to vector<16x100xf32>
    %158 = arith.addf %155, %157 : vector<16x100xf32>
    %c0_60 = arith.constant 0 : index
    %c0_61 = arith.constant 0 : index
    %159 = vector.load %arg16[%c0_60, %c0_61] : memref<16x8xbf16, #tpu.memory_space<vmem>>, vector<16x8xbf16>
    %160 = arith.truncf %136 : vector<8x100xf32> to vector<8x100xbf16>
    %cst_62 = arith.constant dense<0.000000e+00> : vector<16x100xf32>
    %161 = tpu.matmul %159, %160, %cst_62 {dimension_numbers = #tpu.dot_dimension_numbers<[1], [0], [0], [1], [0, 0, 1, 1], [], []>} : vector<16x8xbf16>, vector<8x100xbf16>, vector<16x100xf32> -> vector<16x100xf32>
    %c0_63 = arith.constant 0 : index
    %c0_64 = arith.constant 0 : index
    %162 = vector.load %arg17[%c0_63, %c0_64] : memref<16x1xf32, #tpu.memory_space<vmem>>, vector<16x1xf32>
    %163 = vector.broadcast %162 : vector<16x1xf32> to vector<16x100xf32>
    %164 = arith.addf %161, %163 : vector<16x100xf32>
    %165 = arith.addf %158, %164 : vector<16x100xf32>
    %cst_65 = arith.constant 0.000000e+00 : f32
    %166 = vector.broadcast %cst_65 : f32 to vector<16x100xf32>
    %167 = arith.maximumf %165, %166 : vector<16x100xf32>
    %168 = vector.broadcast %115 : vector<1x100xf32> to vector<16x100xf32>
    %169 = arith.mulf %167, %168 : vector<16x100xf32>
    %c0_66 = arith.constant 0 : index
    %c0_67 = arith.constant 0 : index
    %170 = vector.load %arg25[%c0_66, %c0_67] : memref<1x100xf32, #tpu.memory_space<vmem>>, vector<1x100xf32>
    %171 = arith.truncf %169 : vector<16x100xf32> to vector<16x100xbf16>
    %cst_68 = arith.constant 0.000000e+00 : bf16
    %172 = vector.broadcast %cst_68 : bf16 to vector<16x11xbf16>
    %173 = tpu.concatenate %172, %171, %172 in 1 : vector<16x11xbf16>, vector<16x100xbf16>, vector<16x11xbf16> -> vector<16x122xbf16>
    %174 = vector.extract_strided_slice %173 {offsets = [0, 0], sizes = [16, 100], strides = [1, 1]} : vector<16x122xbf16> to vector<16x100xbf16>
    %175 = vector.extract_strided_slice %173 {offsets = [0, 1], sizes = [16, 100], strides = [1, 1]} : vector<16x122xbf16> to vector<16x100xbf16>
    %176 = vector.extract_strided_slice %173 {offsets = [0, 2], sizes = [16, 100], strides = [1, 1]} : vector<16x122xbf16> to vector<16x100xbf16>
    %177 = vector.extract_strided_slice %173 {offsets = [0, 10], sizes = [16, 100], strides = [1, 1]} : vector<16x122xbf16> to vector<16x100xbf16>
    %178 = vector.extract_strided_slice %173 {offsets = [0, 11], sizes = [16, 100], strides = [1, 1]} : vector<16x122xbf16> to vector<16x100xbf16>
    %179 = vector.extract_strided_slice %173 {offsets = [0, 12], sizes = [16, 100], strides = [1, 1]} : vector<16x122xbf16> to vector<16x100xbf16>
    %180 = vector.extract_strided_slice %173 {offsets = [0, 20], sizes = [16, 100], strides = [1, 1]} : vector<16x122xbf16> to vector<16x100xbf16>
    %181 = vector.extract_strided_slice %173 {offsets = [0, 21], sizes = [16, 100], strides = [1, 1]} : vector<16x122xbf16> to vector<16x100xbf16>
    %182 = vector.extract_strided_slice %173 {offsets = [0, 22], sizes = [16, 100], strides = [1, 1]} : vector<16x122xbf16> to vector<16x100xbf16>
    %183 = tpu.concatenate %174, %175, %176, %177, %178, %179, %180, %181, %182 in 0 : vector<16x100xbf16>, vector<16x100xbf16>, vector<16x100xbf16>, vector<16x100xbf16>, vector<16x100xbf16>, vector<16x100xbf16>, vector<16x100xbf16>, vector<16x100xbf16>, vector<16x100xbf16> -> vector<144x100xbf16>
    %c0_69 = arith.constant 0 : index
    %c0_70 = arith.constant 0 : index
    %184 = vector.load %arg18[%c0_69, %c0_70] : memref<16x144xbf16, #tpu.memory_space<vmem>>, vector<16x144xbf16>
    %cst_71 = arith.constant dense<0.000000e+00> : vector<16x100xf32>
    %185 = tpu.matmul %184, %183, %cst_71 {dimension_numbers = #tpu.dot_dimension_numbers<[1], [0], [0], [1], [0, 0, 1, 1], [], []>} : vector<16x144xbf16>, vector<144x100xbf16>, vector<16x100xf32> -> vector<16x100xf32>
    %c0_72 = arith.constant 0 : index
    %c0_73 = arith.constant 0 : index
    %186 = vector.load %arg19[%c0_72, %c0_73] : memref<16x1xf32, #tpu.memory_space<vmem>>, vector<16x1xf32>
    %187 = vector.broadcast %186 : vector<16x1xf32> to vector<16x100xf32>
    %188 = arith.addf %185, %187 : vector<16x100xf32>
    %cst_74 = arith.constant 0.000000e+00 : f32
    %189 = vector.broadcast %cst_74 : f32 to vector<16x100xf32>
    %190 = arith.maximumf %188, %189 : vector<16x100xf32>
    %191 = vector.broadcast %170 : vector<1x100xf32> to vector<16x100xf32>
    %192 = arith.mulf %190, %191 : vector<16x100xf32>
    %193 = arith.truncf %192 : vector<16x100xf32> to vector<16x100xbf16>
    %cst_75 = arith.constant 0.000000e+00 : bf16
    %194 = vector.broadcast %cst_75 : bf16 to vector<16x11xbf16>
    %195 = tpu.concatenate %194, %193, %194 in 1 : vector<16x11xbf16>, vector<16x100xbf16>, vector<16x11xbf16> -> vector<16x122xbf16>
    %196 = vector.extract_strided_slice %195 {offsets = [0, 0], sizes = [16, 100], strides = [1, 1]} : vector<16x122xbf16> to vector<16x100xbf16>
    %197 = vector.extract_strided_slice %195 {offsets = [0, 1], sizes = [16, 100], strides = [1, 1]} : vector<16x122xbf16> to vector<16x100xbf16>
    %198 = vector.extract_strided_slice %195 {offsets = [0, 2], sizes = [16, 100], strides = [1, 1]} : vector<16x122xbf16> to vector<16x100xbf16>
    %199 = vector.extract_strided_slice %195 {offsets = [0, 10], sizes = [16, 100], strides = [1, 1]} : vector<16x122xbf16> to vector<16x100xbf16>
    %200 = vector.extract_strided_slice %195 {offsets = [0, 11], sizes = [16, 100], strides = [1, 1]} : vector<16x122xbf16> to vector<16x100xbf16>
    %201 = vector.extract_strided_slice %195 {offsets = [0, 12], sizes = [16, 100], strides = [1, 1]} : vector<16x122xbf16> to vector<16x100xbf16>
    %202 = vector.extract_strided_slice %195 {offsets = [0, 20], sizes = [16, 100], strides = [1, 1]} : vector<16x122xbf16> to vector<16x100xbf16>
    %203 = vector.extract_strided_slice %195 {offsets = [0, 21], sizes = [16, 100], strides = [1, 1]} : vector<16x122xbf16> to vector<16x100xbf16>
    %204 = vector.extract_strided_slice %195 {offsets = [0, 22], sizes = [16, 100], strides = [1, 1]} : vector<16x122xbf16> to vector<16x100xbf16>
    %205 = tpu.concatenate %196, %197, %198, %199, %200, %201, %202, %203, %204 in 0 : vector<16x100xbf16>, vector<16x100xbf16>, vector<16x100xbf16>, vector<16x100xbf16>, vector<16x100xbf16>, vector<16x100xbf16>, vector<16x100xbf16>, vector<16x100xbf16>, vector<16x100xbf16> -> vector<144x100xbf16>
    %c0_76 = arith.constant 0 : index
    %c0_77 = arith.constant 0 : index
    %206 = vector.load %arg20[%c0_76, %c0_77] : memref<16x144xbf16, #tpu.memory_space<vmem>>, vector<16x144xbf16>
    %cst_78 = arith.constant dense<0.000000e+00> : vector<16x100xf32>
    %207 = tpu.matmul %206, %205, %cst_78 {dimension_numbers = #tpu.dot_dimension_numbers<[1], [0], [0], [1], [0, 0, 1, 1], [], []>} : vector<16x144xbf16>, vector<144x100xbf16>, vector<16x100xf32> -> vector<16x100xf32>
    %c0_79 = arith.constant 0 : index
    %c0_80 = arith.constant 0 : index
    %208 = vector.load %arg21[%c0_79, %c0_80] : memref<16x1xf32, #tpu.memory_space<vmem>>, vector<16x1xf32>
    %209 = vector.broadcast %208 : vector<16x1xf32> to vector<16x100xf32>
    %210 = arith.addf %207, %209 : vector<16x100xf32>
    %211 = arith.addf %210, %169 : vector<16x100xf32>
    %cst_81 = arith.constant 0.000000e+00 : f32
    %212 = vector.broadcast %cst_81 : f32 to vector<16x100xf32>
    %213 = arith.maximumf %211, %212 : vector<16x100xf32>
    %214 = vector.broadcast %170 : vector<1x100xf32> to vector<16x100xf32>
    %215 = arith.mulf %213, %214 : vector<16x100xf32>
    %cst_82 = arith.constant dense<0.000000e+00> : vector<16xf32>
    %216 = vector.multi_reduction <add>, %215, %cst_82 [1] : vector<16x100xf32> to vector<16xf32>
    %217 = vector.shape_cast %216 : vector<16xf32> to vector<16x1xf32>
    %cst_83 = arith.constant 1.562500e-02 : f32
    %218 = vector.broadcast %cst_83 : f32 to vector<16x1xf32>
    %219 = arith.mulf %217, %218 : vector<16x1xf32>
    %c0_84 = arith.constant 0 : index
    %c0_85 = arith.constant 0 : index
    %220 = vector.load %arg22[%c0_84, %c0_85] : memref<16x16xf32, #tpu.memory_space<vmem>>, vector<16x16xf32>
    %cst_86 = arith.constant dense<0.000000e+00> : vector<16x1xf32>
    %221 = tpu.matmul %220, %219, %cst_86 {dimension_numbers = #tpu.dot_dimension_numbers<[1], [0], [0], [1], [0, 0, 1, 1], [], []>} : vector<16x16xf32>, vector<16x1xf32>, vector<16x1xf32> -> vector<16x1xf32>
    %c0_87 = arith.constant 0 : index
    %c0_88 = arith.constant 0 : index
    %222 = vector.load %arg23[%c0_87, %c0_88] : memref<16x1xf32, #tpu.memory_space<vmem>>, vector<16x1xf32>
    %223 = arith.addf %221, %222 : vector<16x1xf32>
    %224 = vector.shape_cast %223 : vector<16x1xf32> to vector<1x16x1xf32>
    %c0_89 = arith.constant 0 : index
    %c0_90 = arith.constant 0 : index
    %c0_91 = arith.constant 0 : index
    %225 = vector.load %arg27[%c0_89, %c0_90, %c0_91] : memref<1x16x1xf32, #tpu.memory_space<vmem>>, vector<1x16x1xf32>
    tpu.vector_store %arg27[%c0_89, %c0_90, %c0_91], %224 {strides = array<i32>} : memref<1x16x1xf32, #tpu.memory_space<vmem>>, vector<1x16x1xf32>,
    return
  }
  func.func @transform_0(%arg0: i32) -> (i32, i32, i32) {
    %c0_i32 = arith.constant 0 : i32
    %c0_i32_0 = arith.constant 0 : i32
    %c0_i32_1 = arith.constant 0 : i32
    return %arg0, %c0_i32, %c0_i32_0 : i32, i32, i32
  }
  func.func @transform_1(%arg0: i32) -> (i32, i32) {
    %c0_i32 = arith.constant 0 : i32
    %c0_i32_0 = arith.constant 0 : i32
    %c0_i32_1 = arith.constant 0 : i32
    return %c0_i32, %c0_i32_0 : i32, i32
  }
  func.func @transform_2(%arg0: i32) -> (i32, i32) {
    %c0_i32 = arith.constant 0 : i32
    %c0_i32_0 = arith.constant 0 : i32
    %c0_i32_1 = arith.constant 0 : i32
    return %c0_i32, %c0_i32_0 : i32, i32
  }
  func.func @transform_3(%arg0: i32) -> (i32, i32) {
    %c0_i32 = arith.constant 0 : i32
    %c0_i32_0 = arith.constant 0 : i32
    %c0_i32_1 = arith.constant 0 : i32
    return %c0_i32, %c0_i32_0 : i32, i32
  }
  func.func @transform_4(%arg0: i32) -> (i32, i32) {
    %c0_i32 = arith.constant 0 : i32
    %c0_i32_0 = arith.constant 0 : i32
    %c0_i32_1 = arith.constant 0 : i32
    return %c0_i32, %c0_i32_0 : i32, i32
  }
  func.func @transform_5(%arg0: i32) -> (i32, i32) {
    %c0_i32 = arith.constant 0 : i32
    %c0_i32_0 = arith.constant 0 : i32
    %c0_i32_1 = arith.constant 0 : i32
    return %c0_i32, %c0_i32_0 : i32, i32
  }
  func.func @transform_6(%arg0: i32) -> (i32, i32) {
    %c0_i32 = arith.constant 0 : i32
    %c0_i32_0 = arith.constant 0 : i32
    %c0_i32_1 = arith.constant 0 : i32
    return %c0_i32, %c0_i32_0 : i32, i32
  }
  func.func @transform_7(%arg0: i32) -> (i32, i32) {
    %c0_i32 = arith.constant 0 : i32
    %c0_i32_0 = arith.constant 0 : i32
    %c0_i32_1 = arith.constant 0 : i32
    return %c0_i32, %c0_i32_0 : i32, i32
  }
  func.func @transform_8(%arg0: i32) -> (i32, i32) {
    %c0_i32 = arith.constant 0 : i32
    %c0_i32_0 = arith.constant 0 : i32
    %c0_i32_1 = arith.constant 0 : i32
    return %c0_i32, %c0_i32_0 : i32, i32
  }
  func.func @transform_9(%arg0: i32) -> (i32, i32) {
    %c0_i32 = arith.constant 0 : i32
    %c0_i32_0 = arith.constant 0 : i32
    %c0_i32_1 = arith.constant 0 : i32
    return %c0_i32, %c0_i32_0 : i32, i32
  }
  func.func @transform_10(%arg0: i32) -> (i32, i32) {
    %c0_i32 = arith.constant 0 : i32
    %c0_i32_0 = arith.constant 0 : i32
    %c0_i32_1 = arith.constant 0 : i32
    return %c0_i32, %c0_i32_0 : i32, i32
  }
  func.func @transform_11(%arg0: i32) -> (i32, i32) {
    %c0_i32 = arith.constant 0 : i32
    %c0_i32_0 = arith.constant 0 : i32
    %c0_i32_1 = arith.constant 0 : i32
    return %c0_i32, %c0_i32_0 : i32, i32
  }
  func.func @transform_12(%arg0: i32) -> (i32, i32) {
    %c0_i32 = arith.constant 0 : i32
    %c0_i32_0 = arith.constant 0 : i32
    %c0_i32_1 = arith.constant 0 : i32
    return %c0_i32, %c0_i32_0 : i32, i32
  }
  func.func @transform_13(%arg0: i32) -> (i32, i32) {
    %c0_i32 = arith.constant 0 : i32
    %c0_i32_0 = arith.constant 0 : i32
    %c0_i32_1 = arith.constant 0 : i32
    return %c0_i32, %c0_i32_0 : i32, i32
  }
  func.func @transform_14(%arg0: i32) -> (i32, i32) {
    %c0_i32 = arith.constant 0 : i32
    %c0_i32_0 = arith.constant 0 : i32
    %c0_i32_1 = arith.constant 0 : i32
    return %c0_i32, %c0_i32_0 : i32, i32
  }
  func.func @transform_15(%arg0: i32) -> (i32, i32) {
    %c0_i32 = arith.constant 0 : i32
    %c0_i32_0 = arith.constant 0 : i32
    %c0_i32_1 = arith.constant 0 : i32
    return %c0_i32, %c0_i32_0 : i32, i32
  }
  func.func @transform_16(%arg0: i32) -> (i32, i32) {
    %c0_i32 = arith.constant 0 : i32
    %c0_i32_0 = arith.constant 0 : i32
    %c0_i32_1 = arith.constant 0 : i32
    return %c0_i32, %c0_i32_0 : i32, i32
  }
  func.func @transform_17(%arg0: i32) -> (i32, i32) {
    %c0_i32 = arith.constant 0 : i32
    %c0_i32_0 = arith.constant 0 : i32
    %c0_i32_1 = arith.constant 0 : i32
    return %c0_i32, %c0_i32_0 : i32, i32
  }
  func.func @transform_18(%arg0: i32) -> (i32, i32) {
    %c0_i32 = arith.constant 0 : i32
    %c0_i32_0 = arith.constant 0 : i32
    %c0_i32_1 = arith.constant 0 : i32
    return %c0_i32, %c0_i32_0 : i32, i32
  }
  func.func @transform_19(%arg0: i32) -> (i32, i32) {
    %c0_i32 = arith.constant 0 : i32
    %c0_i32_0 = arith.constant 0 : i32
    %c0_i32_1 = arith.constant 0 : i32
    return %c0_i32, %c0_i32_0 : i32, i32
  }
  func.func @transform_20(%arg0: i32) -> (i32, i32) {
    %c0_i32 = arith.constant 0 : i32
    %c0_i32_0 = arith.constant 0 : i32
    %c0_i32_1 = arith.constant 0 : i32
    return %c0_i32, %c0_i32_0 : i32, i32
  }
  func.func @transform_21(%arg0: i32) -> (i32, i32) {
    %c0_i32 = arith.constant 0 : i32
    %c0_i32_0 = arith.constant 0 : i32
    %c0_i32_1 = arith.constant 0 : i32
    return %c0_i32, %c0_i32_0 : i32, i32
  }
  func.func @transform_22(%arg0: i32) -> (i32, i32) {
    %c0_i32 = arith.constant 0 : i32
    %c0_i32_0 = arith.constant 0 : i32
    %c0_i32_1 = arith.constant 0 : i32
    return %c0_i32, %c0_i32_0 : i32, i32
  }
  func.func @transform_23(%arg0: i32) -> (i32, i32) {
    %c0_i32 = arith.constant 0 : i32
    %c0_i32_0 = arith.constant 0 : i32
    %c0_i32_1 = arith.constant 0 : i32
    return %c0_i32, %c0_i32_0 : i32, i32
  }
  func.func @transform_24(%arg0: i32) -> (i32, i32) {
    %c0_i32 = arith.constant 0 : i32
    %c0_i32_0 = arith.constant 0 : i32
    %c0_i32_1 = arith.constant 0 : i32
    return %c0_i32, %c0_i32_0 : i32, i32
  }
  func.func @transform_25(%arg0: i32) -> (i32, i32) {
    %c0_i32 = arith.constant 0 : i32
    %c0_i32_0 = arith.constant 0 : i32
    %c0_i32_1 = arith.constant 0 : i32
    return %c0_i32, %c0_i32_0 : i32, i32
  }
  func.func @transform_26(%arg0: i32) -> (i32, i32, i32) {
    %c0_i32 = arith.constant 0 : i32
    %c0_i32_0 = arith.constant 0 : i32
    %c0_i32_1 = arith.constant 0 : i32
    return %arg0, %c0_i32, %c0_i32_0 : i32, i32, i32
  }
}

</mosaic_0001>

<bundles_post_ra>
// kernel: image_encoder_forward.1
= control target key start
LH: loop header
LB: loop body
LE: loop exit
PB: predicated region body
PF: predicated region fallthrough
CT: control target
= control target key end

     0   :  { %s3910_s0 = inlined_call_operand.vmem [shape: f32[2,8,324], index: 0, kind: input, shape index: {}]   ;;  %s3911_s1 = inlined_call_operand.vmem [shape: bf16[8,72], index: 1, kind: input, shape index: {}]   ;;  %s3912_s2 = inlined_call_operand.vmem [shape: f32[8,1], index: 2, kind: input, shape index: {}]   ;;  %s3913_s3 = inlined_call_operand.vmem [shape: bf16[8,72], index: 3, kind: input, shape index: {}]   ;;  %s3914_s4 = inlined_call_operand.vmem [shape: f32[8,1], index: 4, kind: input, shape index: {}]   ;;  %s3915_s5 = inlined_call_operand.vmem [shape: bf16[8,72], index: 5, kind: input, shape index: {}]   ;;  %s3916_s6 = inlined_call_operand.vmem [shape: f32[8,1], index: 6, kind: input, shape index: {}]   ;;  %s3917_s7 = inlined_call_operand.vmem [shape: bf16[8,72], index: 7, kind: input, shape index: {}]   ;;  %s3918_s8 = inlined_call_operand.vmem [shape: f32[8,1], index: 8, kind: input, shape index: {}]   ;;  %s3919_s9 = inlined_call_operand.vmem [shape: bf16[8,72], index: 9, kind: input, shape index: {}]   ;;  %s3920_s10 = inlined_call_operand.vmem [shape: f32[8,1], index: 10, kind: input, shape index: {}]   ;;  %s3921_s11 = inlined_call_operand.vmem [shape: bf16[16,72], index: 11, kind: input, shape index: {}]   ;;  %s3922_s12 = inlined_call_operand.vmem [shape: f32[16,1], index: 12, kind: input, shape index: {}]   ;;  %s3923_s13 = inlined_call_operand.vmem [shape: bf16[16,144], index: 13, kind: input, shape index: {}]   ;;  %s3924_s14 = inlined_call_operand.vmem [shape: f32[16,1], index: 14, kind: input, shape index: {}]   ;;  %s3925_s15 = inlined_call_operand.vmem [shape: bf16[16,8], index: 15, kind: input, shape index: {}]   ;;  %s3926_s16 = inlined_call_operand.vmem [shape: f32[16,1], index: 16, kind: input, shape index: {}]   ;;  %s3927_s17 = inlined_call_operand.vmem [shape: bf16[16,144], index: 17, kind: input, shape index: {}]   ;;  %s3928_s18 = inlined_call_operand.vmem [shape: f32[16,1], index: 18, kind: input, shape index: {}]   ;;  %s3929_s19 = inlined_call_operand.vmem [shape: bf16[16,144], index: 19, kind: input, shape index: {}]   ;;  %s3930_s20 = inlined_call_operand.vmem [shape: f32[16,1], index: 20, kind: input, shape index: {}]   ;;  %s3931_s21 = inlined_call_operand.vmem [shape: f32[16,16], index: 21, kind: input, shape index: {}]   ;;  %s3932_s22 = inlined_call_operand.vmem [shape: f32[16,1], index: 22, kind: input, shape index: {}]   ;;  %s3933_s23 = inlined_call_operand.vmem [shape: f32[1,324], index: 23, kind: input, shape index: {}]   ;;  %s3934_s24 = inlined_call_operand.vmem [shape: f32[1,100], index: 24, kind: input, shape index: {}]   ;;  %s3935_s25 = inlined_call_operand.hbm [shape: f32[324,100], index: 25, kind: input, shape index: {}]   ;;  %s3936_s26 = inlined_call_operand.vmem [shape: f32[2,16,1], index: 26, kind: output, shape index: {}]  }
   0x1   :  { %3948 = sst [smem:[#allocation5_spill]] %s3910_s0 }
   0x2   :  { %3949 = sst [smem:[#allocation6_spill]] %s3911_s1 }
   0x3   :  { %3950 = sst [smem:[#allocation7_spill]] %s3912_s2 }
   0x4   :  { %3951 = sst [smem:[#allocation8_spill]] %s3913_s3 }
   0x5   :  { %3952 = sst [smem:[#allocation9_spill]] %s3914_s4 }
   0x6   :  { %3953 = sst [smem:[#allocation10_spill]] %s3915_s5 }
   0x7   :  { %3954 = sst [smem:[#allocation11_spill]] %s3916_s6 }
   0x8   :  { %3955 = sst [smem:[#allocation12_spill]] %s3917_s7 }
   0x9   :  { %3956 = sst [smem:[#allocation13_spill]] %s3918_s8 }
   0xa   :  { %3957 = sst [smem:[#allocation14_spill]] %s3919_s9 }
   0xb   :  { %3958 = sst [smem:[#allocation15_spill]] %s3920_s10 }
   0xc   :  { %31 = vsyncpa [#allocation3], 0  ;;  %s3012_s27 = smov 0  }
   0xd LB: > { %s702_s28 = sshll.u32 %s3935_s25, 4  ;;  %s2692_s8 = sadd.s32 4294967295, %s2856_s27   ;;  %s2856_s27 = sphi %s3012_s27, %s37_s27   ;;  %s703_s28 = int_to_ptr.hbm [resolvable:$true] %s702_s28 }
   0xe   : > { %p2694_p0 = scmp.ge.s32.totalorder %s2856_s27, 1  ;;  %p619_p1 = scmp.lt.s32.totalorder %s2856_s27, 3 }
   0xf   : > { %p2783_p2 = scmp.eq.s32.totalorder %s2692_s8, 0  ;;  %s2858_s4 = smov [#allocation2]  }
  0x10   : > { %p620_p3 = pnand %p2694_p0, %p619_p1  ;;  %s704_s29 = sshll.u32 %s2858_s4, 4  ;;  %s705_s29 = int_to_ptr.vmem [resolvable:$true] %s704_s29 }
  0x11   : > { %s2859_s0 = smov 128   ;;  %s2860_s9 = smov 8  }
  0x12   : > { %p2779_p4 = pneg %p620_p3  ;;  %728 = sbr.rel (%p620_p3) target bundleno = 4242 (0x1092), region = 124 }
  0x14   : > { %p2780_p5 = pnand %p2783_p2, %p2779_p4 }
  0x16   : > { %2782 = dma.hbm_to_vmem [thread:$0]  (!%p2780_p5), %s703_s28, 5248, %s705_s29, [#allocation3], %s2859_s0, %s2859_s0, %s2860_s9  }
  0x17   : > { %2851 = dma.done.wait (%p2783_p2), [#allocation3], 5248  }
  0x18   : > { %2853 = vsyncadd (%p2783_p2), [#allocation3], 4294962048  ;;  %p799_p6 = scmp.lt.s32.totalorder %s2692_s8, 1  ;;  %s3959_s10 = sld [smem:[#allocation5_spill]]  ;;  %vm829_vm0 = vcmask 154624   ;;  %vm836_vm1 = vcmask 711680  }
  0x19   : > { %s2861_s1 = smov 19   ;;  %s2862_s3 = smov 92   ;;  %vm916_vm2 = vcmask 1043456   ;;  %vm913_vm3 = vcmask 736256   ;;  %vm895_vm4 = vcmask 752640   ;;  %vm904_vm5 = vcmask 744448  }
  0x1a   : > { %s3978_s8 = smov (!%p799_p6, %s2692_s8), 1  ;;  %s2863_s7 = smov 90   ;;  %v2870_v44 = vmov 0   ;;  %vm877_vm6 = vcmask 891904   ;;  %vm886_vm7 = vcmask 883712   ;;  %vm970_vm8 = vcmask 588800  }
  0x1b   : > { %s2774_s30 = smul.u32 24, %s3978_s8  ;;  %s2864_s28 = smov 109   ;;  %2812 = vset.pattern.permute.xlu0 %v2870_v44  ;;  %2813 = vset.pattern.permute.xlu2 %v2870_v44  ;;  %vm859_vm9 = vcmask 1031168   ;;  %vm868_vm10 = vcmask 900096   ;;  %vm850_vm11 = vcmask 1039360   ;;  %vm2095_vm12 = vcmask 556032  }
  0x1c   : > { %s3937_s4 = smov 126   ;;  %s2866_s29 = smov 91   ;;  %2814 = vset.pattern.permute.xlu1 %v2870_v44  ;;  %vm2359_vm13 = vcmask 64512   ;;  %vm2253_vm14 = vcmask 89088   ;;  %vm2256_vm15 = vcmask 908288  }
  0x1d   : > { %s3945_s0 = smov 108   ;;  %s2868_s9 = smov 110  }
  0x1e   : > { %s803_s6 = scalar_lea.vmem %s3959_s10, %s2774_s30  ;;  %s2869_s30 = smov 127  }
  0x1f   : > { %v810_v0 = vld [vmem:[%s803_s6] sm:$0xff]  ;;  %v811_v1 = vld [vmem:[%s803_s6 + $0x8] sm:$0xff]  ;;  %v812_v2 = vld [vmem:[%s803_s6 + $0x10] sm:$0xff]  ;;  %s3960_s10 = sld [smem:[#allocation7_spill]] }
  0x20   : > { %v813_v3 = vpack.c.bf16 %v811_v1, %v810_v0  ;;  %v814_v6 = vpack.c.bf16 %v812_v2, %v812_v2  ;;  %s3961_s5 = sld [smem:[#allocation6_spill]] }
  0x21   : > { %s3964_s2 = sld [smem:[#allocation11_spill]] }
  0x22   : > { %v818_v4 = vunpack.c.h.b16 %v813_v3  ;;  %v817_v5 = vunpack.c.l.b16 %v813_v3  ;;  %v819_v9 = vunpack.c.l.b16 %v814_v6  ;;  %s3965_s6 = sld [smem:[#allocation10_spill]] }
  0x24   : > { %v821_v7 = vpack.c.b16 %v818_v4, %v818_v4  ;;  %v820_v8 = vpack.c.b16 %v817_v5, %v817_v5  ;;  %v822_v10 = vpack.c.b16 %v819_v9, %v819_v9 }
  0x25   : > { %v964_v43 = vld [vmem:[%s3960_s10] sm:$0xff]  ;;  %s3962_s10 = sld [smem:[#allocation9_spill]] }
  0x26   : > { %825 = vrot.lane.b32.xlu0 %v821_v7, %s2861_s1  ;;  %823 = vrot.lane.b32.xlu1 %v820_v8, %s2861_s1  ;;  %v963_v0 = vld [vmem:[%s3961_s5] sm:$0xf]  ;;  %s3963_s5 = sld [smem:[#allocation8_spill]] }
  0x2e   : > { %827 = vrot.lane.b32.xlu0 %v822_v10, %s2861_s1 }
  0x98   : > { %v826_v11 = vpop.permute.xlu0 %825  ;;  %v824_v12 = vpop.permute.xlu1 %823 }
  0x99   : > { %v3033_v13 = vsel %vm829_vm0, %v824_v12, %v826_v11  ;;  %v3036_v14 = vsel %vm829_vm0, 0, %v824_v12 }
  0x9a   : > { %889 = vrot.lane.b32.xlu0 %v3036_v14, %s2862_s3  ;;  %907 = vrot.lane.b32.xlu1 %v3036_v14, %s2863_s7  ;;  %v841_v18 = vrot.slane %v3036_v14, 4  ;;  %v842_v19 = vrot.slane %v3033_v13, 4 }
  0x9b   : > { %909 = vrot.lane.b32.xlu2 %v3033_v13, %s2863_s7 }
  0xa0   : > { %v828_v15 = vpop.permute.xlu0 %827 }
  0xa1   : > { %v831_v16 = vsel %vm829_vm0, %v826_v11, %v828_v15 }
  0xa2   : > { %v3046_v17 = vsel %vm836_vm1, %v831_v16, 0  ;;  %871 = vrot.lane.b32.xlu0 %v3036_v14, %s2864_s28  ;;  %891 = vrot.lane.b32.xlu1 %v3033_v13, %s2862_s3 }
  0xa3   : > { %911 = vrot.lane.b32.xlu2 %v3046_v17, %s2863_s7  ;;  %v843_v20 = vrot.slane %v3046_v17, 4 }
  0xaa   : > { %853 = vrot.lane.b32.xlu0 %v3036_v14, %s3937_s4  ;;  %873 = vrot.lane.b32.xlu1 %v3033_v13, %s2864_s28 }
  0xab   : > { %893 = vrot.lane.b32.xlu2 %v3046_v17, %s2862_s3 }
  0xb2   : > { %898 = vrot.lane.b32.xlu0 %v841_v18, %s2866_s29  ;;  %855 = vrot.lane.b32.xlu1 %v3033_v13, %s3937_s4 }
  0xb3   : > { %875 = vrot.lane.b32.xlu2 %v3046_v17, %s2864_s28 }
  0xba   : > { %880 = vrot.lane.b32.xlu0 %v841_v18, %s3945_s0  ;;  %900 = vrot.lane.b32.xlu1 %v842_v19, %s2866_s29 }
  0xbb   : > { %857 = vrot.lane.b32.xlu2 %v3046_v17, %s3937_s4 }
  0xc2   : > { %862 = vrot.lane.b32.xlu0 %v841_v18, %s2868_s9  ;;  %882 = vrot.lane.b32.xlu1 %v842_v19, %s3945_s0 }
  0xc3   : > { %902 = vrot.lane.b32.xlu2 %v843_v20, %s2866_s29 }
  0xca   : > { %844 = vrot.lane.b32.xlu0 %v841_v18, %s2869_s30  ;;  %864 = vrot.lane.b32.xlu1 %v842_v19, %s2868_s9  ;;  %v1022_v18 = vld [vmem:[%s3933_s23] sm:$0x7] }
  0xcb   : > { %884 = vrot.lane.b32.xlu2 %v843_v20, %s3945_s0 }
  0xd2   : > { %846 = vrot.lane.b32.xlu1 %v842_v19, %s2869_s30  ;;  %967 = vperm.xlu0 %2812, %v964_v43  }
  0xd3   : > { %866 = vrot.lane.b32.xlu2 %v843_v20, %s2868_s9 }
  0xdb   : > { %848 = vrot.lane.b32.xlu2 %v843_v20, %s2869_s30  ;;  %v3127_v20 = vperm.slane %v1022_v18, 0 }
  0xf5   : > { %v910_v21 = vpop.permute.xlu2 %909 }
  0xfd   : > { %v912_v22 = vpop.permute.xlu2 %911 }
  0xfe   : > { %v981_v23 = vsel %vm916_vm2, %v912_v22, 0  ;;  %v915_v24 = vsel %vm913_vm3, %v910_v21, %v912_v22 }
  0xff   : > { %1012 = vmatpush.bf16.msra.mxu2 %v981_v23  ;;  %v978_v25 = vsel %vm916_vm2, %v915_v24, 0 }
 0x100   : > { %999 = vmatpush.bf16.msra.mxu1 %v978_v25 }
 0x105   : > { %v894_v26 = vpop.permute.xlu2 %893 }
 0x10c   : > { %v890_v27 = vpop.permute.xlu0 %889  ;;  %v908_v28 = vpop.permute.xlu1 %907 }
 0x10d   : > { %v876_v29 = vpop.permute.xlu2 %875  ;;  %v914_v30 = vsel %vm913_vm3, %v908_v28, %v910_v21  ;;  %v3129_v21 = vperm.slane %v1022_v18, 1 }
 0x10e   : > { %v975_v31 = vsel %vm916_vm2, %v914_v30, 0 }
 0x10f   : > { %986 = vmatpush.bf16.msra.mxu0 %v975_v31 }
 0x114   : > { %v872_v32 = vpop.permute.xlu0 %871  ;;  %v892_v33 = vpop.permute.xlu1 %891 }
 0x115   : > { %v858_v34 = vpop.permute.xlu2 %857  ;;  %v896_v47 = vsel %vm895_vm4, %v890_v27, %v892_v33  ;;  %v897_v49 = vsel %vm895_vm4, %v892_v33, %v894_v26 }
 0x11c   : > { %v854_v35 = vpop.permute.xlu0 %853  ;;  %v874_v36 = vpop.permute.xlu1 %873 }
 0x11d   : > { %v903_v37 = vpop.permute.xlu2 %902  ;;  %v878_v57 = vsel %vm877_vm6, %v872_v32, %v874_v36  ;;  %v879_v59 = vsel %vm877_vm6, %v874_v36, %v876_v29 }
 0x11e   : > { %v961_v38 = vsel %vm916_vm2, %v894_v26, %v903_v37  ;;  %v3131_v26 = vperm.slane %v1022_v18, 2 }
 0x11f   : > { %1013 = vmatpush.bf16.msra.mxu2 %v961_v38 }
 0x124   : > { %v856_v39 = vpop.permute.xlu1 %855  ;;  %v899_v41 = vpop.permute.xlu0 %898 }
 0x125   : > { %v885_v40 = vpop.permute.xlu2 %884  ;;  %v860_v3 = vsel %vm859_vm9, %v854_v35, %v856_v39  ;;  %v861_v5 = vsel %vm859_vm9, %v856_v39, %v858_v34 }
 0x126   : > { %v949_v42 = vsel %vm916_vm2, %v876_v29, %v885_v40 }
 0x127   : > { %1014 = vmatpush.bf16.msra.mxu2 %v949_v42 }
 0x12c   : > { %v901_v45 = vpop.permute.xlu1 %900  ;;  %v881_v54 = vpop.permute.xlu0 %880 }
 0x12d   : > { %v867_v46 = vpop.permute.xlu2 %866  ;;  %v905_v48 = vsel %vm904_vm5, %v899_v41, %v901_v45  ;;  %v906_v50 = vsel %vm904_vm5, %v901_v45, %v903_v37 }
 0x12e   : > { %v953_v51 = vsel %vm916_vm2, %v896_v47, %v905_v48  ;;  %v957_v52 = vsel %vm916_vm2, %v897_v49, %v906_v50  ;;  %v937_v53 = vsel %vm916_vm2, %v858_v34, %v867_v46 }
 0x12f   : > { %987 = vmatpush.bf16.msra.mxu0 %v953_v51  ;;  %1000 = vmatpush.bf16.msra.mxu1 %v957_v52 }
 0x130   : > { %1015 = vmatpush.bf16.msra.mxu2 %v937_v53 }
 0x134   : > { %v883_v55 = vpop.permute.xlu1 %882  ;;  %v863_v1 = vpop.permute.xlu0 %862 }
 0x135   : > { %v849_v56 = vpop.permute.xlu2 %848  ;;  %v887_v58 = vsel %vm886_vm7, %v881_v54, %v883_v55  ;;  %v888_v60 = vsel %vm886_vm7, %v883_v55, %v885_v40 }
 0x136   : > { %v941_v61 = vsel %vm916_vm2, %v878_v57, %v887_v58  ;;  %v945_v62 = vsel %vm916_vm2, %v879_v59, %v888_v60  ;;  %v925_v63 = vsel %vm916_vm2, %v3046_v17, %v849_v56 }
 0x137   : > { %988 = vmatpush.bf16.msra.mxu0 %v941_v61  ;;  %1001 = vmatpush.bf16.msra.mxu1 %v945_v62 }
 0x138   : > { %1016 = vmatpush.bf16.msra.mxu2 %v925_v63 }
 0x13b   : > { %2704 = vmatmul.msk.bf16.vlgmr.msra.gmra.mxu2 %vm970_vm8, %v963_v0 }
 0x13c   : > { %v865_v2 = vpop.permute.xlu1 %864  ;;  %v845_v9 = vpop.permute.xlu0 %844 }
 0x13d   : > { %v869_v4 = vsel %vm868_vm10, %v863_v1, %v865_v2  ;;  %v870_v6 = vsel %vm868_vm10, %v865_v2, %v867_v46 }
 0x13e   : > { %v929_v7 = vsel %vm916_vm2, %v860_v3, %v869_v4  ;;  %v933_v8 = vsel %vm916_vm2, %v861_v5, %v870_v6 }
 0x13f   : > { %989 = vmatpush.bf16.msra.mxu0 %v929_v7  ;;  %1002 = vmatpush.bf16.msra.mxu1 %v933_v8 }
 0x144   : > { %v847_v10 = vpop.permute.xlu1 %846  ;;  %v968_v19 = vpop.permute.xlu0 %967 }
 0x145   : > { %v851_v11 = vsel %vm850_vm11, %v845_v9, %v847_v10  ;;  %v852_v12 = vsel %vm850_vm11, %v847_v10, %v849_v56 }
 0x146   : > { %v918_v15 = vsel %vm916_vm2, %v3036_v14, %v851_v11  ;;  %v922_v16 = vsel %vm916_vm2, %v3033_v13, %v852_v12 }
 0x147   : > { %990 = vmatpush.bf16.msra.mxu0 %v918_v15  ;;  %1003 = vmatpush.bf16.msra.mxu1 %v922_v16  ;;  %v1171_v15 = vld [vmem:[%s3962_s10] sm:$0xff]  ;;  %s3966_s10 = sld [smem:[#allocation13_spill]] }
 0x14a   : > { %2702 = vmatmul.msk.bf16.vlgmr.msra.gmra.mxu0 %vm970_vm8, %v963_v0  ;;  %2703 = vmatmul.msk.bf16.vlgmr.msra.gmra.mxu1 %vm970_vm8, %v963_v0 }
 0x1be   : > { %v1018_v17 = vpop.f32.mrf.mxu2 }
 0x1bf   : > { %v1019_v25 = vadd.f32 %v1018_v17, %v968_v19 }
 0x1c1   : > { %v3142_v30 = vmul.f32 %v3131_v26, %v1019_v25 }
 0x1c3   : > { %v1034_v35 = vpack.c.bf16 %v3142_v30, %v3142_v30 }
 0x1c5   : > { %v1039_v38 = vunpack.c.l.b16 %v1034_v35 }
 0x1c6   : > { %v1020_v14 = vpop.f32.mrf.mxu2 }
 0x1c7   : > { %v992_v22 = vpop.f32.mrf.mxu0  ;;  %v1005_v23 = vpop.f32.mrf.mxu1  ;;  %v1042_v39 = vpack.c.b16 %v1039_v38, %v1039_v38  ;;  %v1170_v38 = vld [vmem:[%s3963_s5] sm:$0xf]  ;;  %s3967_s5 = sld [smem:[#allocation12_spill]] }
 0x1c8   : > { %v993_v13 = vadd.f32 %v992_v22, %v968_v19  ;;  %v1006_v24 = vadd.f32 %v1005_v23, %v968_v19 }
 0x1ca   : > { %v3134_v27 = vmul.f32 %v3127_v20, %v993_v13  ;;  %v3137_v28 = vmul.f32 %v3129_v21, %v1006_v24 }
 0x1cc   : > { %v1033_v29 = vpack.c.bf16 %v3137_v28, %v3134_v27 }
 0x1ce   : > { %v1038_v31 = vunpack.c.h.b16 %v1033_v29  ;;  %v1037_v32 = vunpack.c.l.b16 %v1033_v29 }
 0x1cf   : > { %v994_v33 = vpop.f32.mrf.mxu0  ;;  %v1007_v34 = vpop.f32.mrf.mxu1 }
 0x1d0   : > { %v1041_v36 = vpack.c.b16 %v1038_v31, %v1038_v31  ;;  %v1040_v37 = vpack.c.b16 %v1037_v32, %v1037_v32 }
 0x1d2   : > { %1045 = vrot.lane.b32.xlu2 %v1041_v36, %s2861_s1  ;;  %1043 = vrot.lane.b32.xlu1 %v1040_v37, %s2861_s1 }
 0x1da   : > { %1047 = vrot.lane.b32.xlu1 %v1042_v39, %s2861_s1 }
 0x22c   : > { %v1046_v40 = vpop.permute.xlu2 %1045 }
 0x244   : > { %v1044_v41 = vpop.permute.xlu1 %1043 }
 0x245   : > { %v3150_v42 = vsel %vm829_vm0, %v1044_v41, %v1046_v40  ;;  %v3153_v43 = vsel %vm829_vm0, 0, %v1044_v41 }
 0x246   : > { %1100 = vrot.lane.b32.xlu1 %v3153_v43, %s2862_s3  ;;  %1116 = vrot.lane.b32.xlu2 %v3153_v43, %s2863_s7  ;;  %v1057_v44 = vrot.slane %v3153_v43, 4  ;;  %v1058_v45 = vrot.slane %v3150_v42, 4 }
 0x247   : > { %1118 = vrot.lane.b32.xlu0 %v3150_v42, %s2863_s7 }
 0x24c   : > { %v1048_v46 = vpop.permute.xlu1 %1047 }
 0x24d   : > { %v1050_v47 = vsel %vm829_vm0, %v1046_v40, %v1048_v46 }
 0x24e   : > { %1086 = vrot.lane.b32.xlu1 %v3150_v42, %s2864_s28  ;;  %1102 = vrot.lane.b32.xlu2 %v3150_v42, %s2862_s3  ;;  %v3179_v48 = vsel %vm836_vm1, %v1050_v47, 0 }
 0x24f   : > { %1084 = vrot.lane.b32.xlu0 %v3153_v43, %s2864_s28  ;;  %v1059_v49 = vrot.slane %v3179_v48, 4 }
 0x256   : > { %1070 = vrot.lane.b32.xlu1 %v3150_v42, %s3937_s4  ;;  %1092 = vrot.lane.b32.xlu2 %v1057_v44, %s3945_s0 }
 0x257   : > { %1068 = vrot.lane.b32.xlu0 %v3153_v43, %s3937_s4 }
 0x25e   : > { %1076 = vrot.lane.b32.xlu2 %v1057_v44, %s2868_s9  ;;  %1110 = vrot.lane.b32.xlu1 %v1058_v45, %s2866_s29 }
 0x25f   : > { %1108 = vrot.lane.b32.xlu0 %v1057_v44, %s2866_s29 }
 0x266   : > { %1062 = vrot.lane.b32.xlu1 %v1058_v45, %s2869_s30  ;;  %1120 = vrot.lane.b32.xlu2 %v3179_v48, %s2863_s7 }
 0x267   : > { %1094 = vrot.lane.b32.xlu0 %v1058_v45, %s3945_s0 }
 0x26e   : > { %1104 = vrot.lane.b32.xlu1 %v3179_v48, %s2862_s3  ;;  %1112 = vrot.lane.b32.xlu2 %v1059_v49, %s2866_s29 }
 0x26f   : > { %1078 = vrot.lane.b32.xlu0 %v1058_v45, %s2868_s9 }
 0x276   : > { %1088 = vrot.lane.b32.xlu1 %v3179_v48, %s2864_s28  ;;  %1096 = vrot.lane.b32.xlu2 %v1059_v49, %s3945_s0 }
 0x277   : > { %1060 = vrot.lane.b32.xlu0 %v1057_v44, %s2869_s30 }
 0x27e   : > { %1064 = vrot.lane.b32.xlu1 %v1059_v49, %s2869_s30  ;;  %1072 = vrot.lane.b32.xlu2 %v3179_v48, %s3937_s4 }
 0x27f   : > { %1080 = vrot.lane.b32.xlu0 %v1059_v49, %s2868_s9 }
 0x286   : > { %1174 = vperm.xlu2 %2813, %v1171_v15  }
 0x2a0   : > { %v1117_v50 = vpop.permute.xlu2 %1116 }
 0x2a8   : > { %v1103_v51 = vpop.permute.xlu2 %1102 }
 0x2b0   : > { %v1093_v52 = vpop.permute.xlu2 %1092 }
 0x2b8   : > { %v1077_v53 = vpop.permute.xlu2 %1076  ;;  %v1101_v54 = vpop.permute.xlu1 %1100 }
 0x2b9   : > { %v1119_v55 = vpop.permute.xlu0 %1118  ;;  %v1106_v4 = vsel %vm895_vm4, %v1101_v54, %v1103_v51 }
 0x2ba   : > { %v1122_v56 = vsel %vm913_vm3, %v1117_v50, %v1119_v55 }
 0x2bb   : > { %v1181_v57 = vsel %vm916_vm2, %v1122_v56, 0 }
 0x2bc   : > { %1192 = vmatpush.bf16.msra.mxu3 %v1181_v57 }
 0x2c0   : > { %v1121_v58 = vpop.permute.xlu2 %1120  ;;  %v1087_v59 = vpop.permute.xlu1 %1086 }
 0x2c1   : > { %v1085_v60 = vpop.permute.xlu0 %1084  ;;  %v1187_v61 = vsel %vm916_vm2, %v1121_v58, 0  ;;  %v1123_v62 = vsel %vm913_vm3, %v1119_v55, %v1121_v58 }
 0x2c2   : > { %1218 = vmatpush.bf16.msrb.mxu1 %v1187_v61  ;;  %v1184_v63 = vsel %vm916_vm2, %v1123_v62, 0  ;;  %v1090_v9 = vsel %vm877_vm6, %v1085_v60, %v1087_v59 }
 0x2c3   : > { %1205 = vmatpush.bf16.msrb.mxu0 %v1184_v63 }
 0x2c8   : > { %v1071_v0 = vpop.permute.xlu1 %1070  ;;  %v1113_v11 = vpop.permute.xlu2 %1112 }
 0x2c9   : > { %v1069_v1 = vpop.permute.xlu0 %1068 }
 0x2ca   : > { %v1074_v22 = vsel %vm859_vm9, %v1069_v1, %v1071_v0 }
 0x2d0   : > { %v1111_v2 = vpop.permute.xlu1 %1110  ;;  %v1097_v25 = vpop.permute.xlu2 %1096 }
 0x2d1   : > { %v1109_v3 = vpop.permute.xlu0 %1108  ;;  %v1115_v14 = vsel %vm904_vm5, %v1111_v2, %v1113_v11 }
 0x2d2   : > { %v1114_v5 = vsel %vm904_vm5, %v1109_v3, %v1111_v2 }
 0x2d3   : > { %v1160_v6 = vsel %vm916_vm2, %v1106_v4, %v1114_v5 }
 0x2d4   : > { %1193 = vmatpush.bf16.msra.mxu3 %v1160_v6 }
 0x2d8   : > { %v1063_v7 = vpop.permute.xlu1 %1062  ;;  %v1073_v39 = vpop.permute.xlu2 %1072 }
 0x2d9   : > { %v1095_v8 = vpop.permute.xlu0 %1094  ;;  %v1075_v45 = vsel %vm859_vm9, %v1071_v0, %v1073_v39 }
 0x2da   : > { %v1098_v10 = vsel %vm886_vm7, %v1093_v52, %v1095_v8  ;;  %v1099_v34 = vsel %vm886_vm7, %v1095_v8, %v1097_v25 }
 0x2db   : > { %v1148_v12 = vsel %vm916_vm2, %v1090_v9, %v1098_v10 }
 0x2dc   : > { %1194 = vmatpush.bf16.msra.mxu3 %v1148_v12 }
 0x2e0   : > { %v1105_v16 = vpop.permute.xlu1 %1104 }
 0x2e1   : > { %v1079_v17 = vpop.permute.xlu0 %1078  ;;  %v1168_v18 = vsel %vm916_vm2, %v1105_v16, %v1113_v11  ;;  %v1107_v19 = vsel %vm895_vm4, %v1103_v51, %v1105_v16  ;;  %v1175_v51 = vpop.permute.xlu2 %1174 }
 0x2e2   : > { %1219 = vmatpush.bf16.msrb.mxu1 %v1168_v18  ;;  %v1082_v23 = vsel %vm868_vm10, %v1077_v53, %v1079_v17  ;;  %v1164_v13 = vsel %vm916_vm2, %v1107_v19, %v1115_v14 }
 0x2e3   : > { %v1136_v24 = vsel %vm916_vm2, %v1074_v22, %v1082_v23  ;;  %1206 = vmatpush.bf16.msrb.mxu0 %v1164_v13  ;;  %v1372_v22 = vld [vmem:[%s3964_s2] sm:$0xff]  ;;  %s3968_s2 = sld [smem:[#allocation15_spill]] }
 0x2e4   : > { %1195 = vmatpush.bf16.msra.mxu3 %v1136_v24 }
 0x2e8   : > { %v1089_v29 = vpop.permute.xlu1 %1088 }
 0x2e9   : > { %v1061_v31 = vpop.permute.xlu0 %1060  ;;  %v1156_v32 = vsel %vm916_vm2, %v1089_v29, %v1097_v25  ;;  %v1091_v33 = vsel %vm877_vm6, %v1087_v59, %v1089_v29 }
 0x2ea   : > { %v1066_v35 = vsel %vm850_vm11, %v1061_v31, %v1063_v7  ;;  %1220 = vmatpush.bf16.msrb.mxu1 %v1156_v32  ;;  %v1152_v36 = vsel %vm916_vm2, %v1091_v33, %v1099_v34 }
 0x2eb   : > { %v1125_v37 = vsel %vm916_vm2, %v3153_v43, %v1066_v35  ;;  %1207 = vmatpush.bf16.msrb.mxu0 %v1152_v36 }
 0x2ec   : > { %1196 = vmatpush.bf16.msra.mxu3 %v1125_v37 }
 0x2ef   : > { %2705 = vmatmul.msk.bf16.vlgmr.msra.gmra.mxu3 %vm970_vm8, %v1170_v38 }
 0x2f0   : > { %v1065_v41 = vpop.permute.xlu1 %1064 }
 0x2f1   : > { %v1081_v40 = vpop.permute.xlu0 %1080  ;;  %v1067_v47 = vsel %vm850_vm11, %v1063_v7, %v1065_v41  ;;  %v1132_v49 = vsel %vm916_vm2, %v3179_v48, %v1065_v41 }
 0x2f2   : > { %v1144_v44 = vsel %vm916_vm2, %v1073_v39, %v1081_v40  ;;  %v1083_v46 = vsel %vm868_vm10, %v1079_v17, %v1081_v40  ;;  %v1129_v50 = vsel %vm916_vm2, %v3150_v42, %v1067_v47 }
 0x2f3   : > { %1221 = vmatpush.bf16.msrb.mxu1 %v1144_v44  ;;  %v1140_v43 = vsel %vm916_vm2, %v1075_v45, %v1083_v46 }
 0x2f4   : > { %1208 = vmatpush.bf16.msrb.mxu0 %v1140_v43 }
 0x2f7   : > { %1222 = vmatpush.bf16.msrb.mxu1 %v1132_v49 }
 0x2f8   : > { %1209 = vmatpush.bf16.msrb.mxu0 %v1129_v50 }
 0x2fa   : > { %2707 = vmatmul.msk.bf16.vlgmr.msrb.gmra.mxu1 %vm970_vm8, %v1170_v38 }
 0x2fb   : > { %2706 = vmatmul.msk.bf16.vlgmr.msrb.gmra.mxu0 %vm970_vm8, %v1170_v38 }
 0x372   : > { %v1198_v52 = vpop.f32.mrf.mxu3 }
 0x373   : > { %v1199_v53 = vadd.f32 %v1198_v52, %v1175_v51 }
 0x375   : > { %v1228_v54 = vmax.f32 %v1199_v53, 0.0 }
 0x377   : > { %v1224_v55 = vpop.f32.mrf.mxu1  ;;  %v1231_v61 = vmul.f32 %v1228_v54, %v3127_v20 }
 0x378   : > { %v1211_v56 = vpop.f32.mrf.mxu0  ;;  %v1225_v57 = vadd.f32 %v1224_v55, %v1175_v51 }
 0x379   : > { %v1212_v58 = vadd.f32 %v1211_v56, %v1175_v51 }
 0x37a   : > { %v1230_v59 = vmax.f32 %v1225_v57, 0.0  ;;  %v1200_v60 = vpop.f32.mrf.mxu3 }
 0x37b   : > { %v1229_v48 = vmax.f32 %v1212_v58, 0.0 }
 0x37c   : > { %v1233_v42 = vmul.f32 %v1230_v59, %v3131_v26 }
 0x37d   : > { %v1232_v62 = vmul.f32 %v1229_v48, %v3129_v21 }
 0x37e   : > { %v1235_v63 = vpack.c.bf16 %v1233_v42, %v1233_v42 }
 0x37f   : > { %v1234_v0 = vpack.c.bf16 %v1232_v62, %v1231_v61  ;;  %v1226_v1 = vpop.f32.mrf.mxu1  ;;  %v1371_v61 = vld [vmem:[%s3965_s6] sm:$0xf]  ;;  %s3969_s6 = sld [smem:[#allocation14_spill]] }
 0x380   : > { %v1240_v2 = vunpack.c.l.b16 %v1235_v63  ;;  %v1213_v3 = vpop.f32.mrf.mxu0 }
 0x381   : > { %v1239_v4 = vunpack.c.h.b16 %v1234_v0  ;;  %v1238_v5 = vunpack.c.l.b16 %v1234_v0 }
 0x382   : > { %v1243_v6 = vpack.c.b16 %v1240_v2, %v1240_v2 }
 0x383   : > { %v1242_v7 = vpack.c.b16 %v1239_v4, %v1239_v4  ;;  %v1241_v8 = vpack.c.b16 %v1238_v5, %v1238_v5 }
 0x384   : > { %1248 = vrot.lane.b32.xlu1 %v1243_v6, %s2861_s1 }
 0x385   : > { %1246 = vrot.lane.b32.xlu0 %v1242_v7, %s2861_s1  ;;  %1244 = vrot.lane.b32.xlu2 %v1241_v8, %s2861_s1 }
 0x3df   : > { %v1245_v9 = vpop.permute.xlu2 %1244 }
 0x3e0   : > { %v3248_v10 = vsel %vm829_vm0, 0, %v1245_v9 }
 0x3e1   : > { %1317 = vrot.lane.b32.xlu0 %v3248_v10, %s2863_s7  ;;  %v1258_v18 = vrot.slane %v3248_v10, 4 }
 0x3e9   : > { %1301 = vrot.lane.b32.xlu0 %v3248_v10, %s2862_s3 }
 0x3f1   : > { %1285 = vrot.lane.b32.xlu0 %v3248_v10, %s2864_s28 }
 0x3f6   : > { %v1249_v11 = vpop.permute.xlu1 %1248 }
 0x3f7   : > { %v1247_v12 = vpop.permute.xlu0 %1246 }
 0x3f8   : > { %v3257_v15 = vsel %vm829_vm0, %v1245_v9, %v1247_v12  ;;  %v1251_v16 = vsel %vm829_vm0, %v1247_v12, %v1249_v11 }
 0x3f9   : > { %v3261_v17 = vsel %vm836_vm1, %v1251_v16, 0  ;;  %1269 = vrot.lane.b32.xlu0 %v3248_v10, %s3937_s4  ;;  %1319 = vrot.lane.b32.xlu1 %v3257_v15, %s2863_s7  ;;  %v1259_v19 = vrot.slane %v3257_v15, 4 }
 0x3fa   : > { %1321 = vrot.lane.b32.xlu2 %v3261_v17, %s2863_s7  ;;  %v1260_v14 = vrot.slane %v3261_v17, 4 }
 0x401   : > { %1309 = vrot.lane.b32.xlu0 %v1258_v18, %s2866_s29  ;;  %1303 = vrot.lane.b32.xlu1 %v3257_v15, %s2862_s3 }
 0x402   : > { %1305 = vrot.lane.b32.xlu2 %v3261_v17, %s2862_s3 }
 0x409   : > { %1293 = vrot.lane.b32.xlu0 %v1258_v18, %s3945_s0  ;;  %1287 = vrot.lane.b32.xlu1 %v3257_v15, %s2864_s28 }
 0x40a   : > { %1289 = vrot.lane.b32.xlu2 %v3261_v17, %s2864_s28 }
 0x411   : > { %1277 = vrot.lane.b32.xlu0 %v1258_v18, %s2868_s9  ;;  %1271 = vrot.lane.b32.xlu1 %v3257_v15, %s3937_s4 }
 0x412   : > { %1273 = vrot.lane.b32.xlu2 %v3261_v17, %s3937_s4 }
 0x419   : > { %1261 = vrot.lane.b32.xlu0 %v1258_v18, %s2869_s30  ;;  %1311 = vrot.lane.b32.xlu1 %v1259_v19, %s2866_s29 }
 0x41a   : > { %1313 = vrot.lane.b32.xlu2 %v1260_v14, %s2866_s29 }
 0x421   : > { %1375 = vperm.xlu0 %2812, %v1372_v22   ;;  %1295 = vrot.lane.b32.xlu1 %v1259_v19, %s3945_s0 }
 0x422   : > { %1297 = vrot.lane.b32.xlu2 %v1260_v14, %s3945_s0 }
 0x429   : > { %1279 = vrot.lane.b32.xlu1 %v1259_v19, %s2868_s9 }
 0x42a   : > { %1281 = vrot.lane.b32.xlu2 %v1260_v14, %s2868_s9 }
 0x431   : > { %1263 = vrot.lane.b32.xlu1 %v1259_v19, %s2869_s30 }
 0x432   : > { %1265 = vrot.lane.b32.xlu2 %v1260_v14, %s2869_s30 }
 0x453   : > { %v1318_v25 = vpop.permute.xlu0 %1317 }
 0x454   : > { %v1322_v23 = vpop.permute.xlu2 %1321 }
 0x455   : > { %v1388_v13 = vsel %vm916_vm2, %v1322_v23, 0 }
 0x456   : > { %1419 = vmatpush.bf16.msra.mxu0 %v1388_v13 }
 0x45b   : > { %v1302_v31 = vpop.permute.xlu0 %1301 }
 0x45c   : > { %v1306_v24 = vpop.permute.xlu2 %1305 }
 0x463   : > { %v1286_v38 = vpop.permute.xlu0 %1285 }
 0x464   : > { %v1290_v29 = vpop.permute.xlu2 %1289 }
 0x46b   : > { %v1320_v32 = vpop.permute.xlu1 %1319  ;;  %v1270_v44 = vpop.permute.xlu0 %1269 }
 0x46c   : > { %v1274_v33 = vpop.permute.xlu2 %1273  ;;  %v1323_v34 = vsel %vm913_vm3, %v1318_v25, %v1320_v32  ;;  %v1324_v35 = vsel %vm913_vm3, %v1320_v32, %v1322_v23 }
 0x46d   : > { %v1382_v36 = vsel %vm916_vm2, %v1323_v34, 0  ;;  %v1385_v37 = vsel %vm916_vm2, %v1324_v35, 0 }
 0x46e   : > { %1393 = vmatpush.bf16.msrb.mxu2 %v1382_v36  ;;  %1406 = vmatpush.bf16.msrb.mxu3 %v1385_v37 }
 0x473   : > { %v1304_v39 = vpop.permute.xlu1 %1303  ;;  %v1310_v50 = vpop.permute.xlu0 %1309 }
 0x474   : > { %v1314_v40 = vpop.permute.xlu2 %1313  ;;  %v1307_v53 = vsel %vm895_vm4, %v1302_v31, %v1304_v39  ;;  %v1308_v54 = vsel %vm895_vm4, %v1304_v39, %v1306_v24 }
 0x475   : > { %v1369_v41 = vsel %vm916_vm2, %v1306_v24, %v1314_v40 }
 0x476   : > { %1420 = vmatpush.bf16.msra.mxu0 %v1369_v41 }
 0x47b   : > { %v1288_v45 = vpop.permute.xlu1 %1287  ;;  %v1294_v48 = vpop.permute.xlu0 %1293 }
 0x47c   : > { %v1298_v46 = vpop.permute.xlu2 %1297  ;;  %v1291_v62 = vsel %vm877_vm6, %v1286_v38, %v1288_v45  ;;  %v1292_v63 = vsel %vm877_vm6, %v1288_v45, %v1290_v29 }
 0x47d   : > { %v1357_v43 = vsel %vm916_vm2, %v1290_v29, %v1298_v46 }
 0x47e   : > { %1421 = vmatpush.bf16.msra.mxu0 %v1357_v43 }
 0x483   : > { %v1272_v47 = vpop.permute.xlu1 %1271  ;;  %v1278_v4 = vpop.permute.xlu0 %1277 }
 0x484   : > { %v1282_v49 = vpop.permute.xlu2 %1281  ;;  %v1275_v6 = vsel %vm859_vm9, %v1270_v44, %v1272_v47  ;;  %v1276_v7 = vsel %vm859_vm9, %v1272_v47, %v1274_v33 }
 0x485   : > { %v1345_v51 = vsel %vm916_vm2, %v1274_v33, %v1282_v49 }
 0x486   : > { %1422 = vmatpush.bf16.msra.mxu0 %v1345_v51 }
 0x48b   : > { %v1312_v52 = vpop.permute.xlu1 %1311  ;;  %v1262_v16 = vpop.permute.xlu0 %1261 }
 0x48c   : > { %v1315_v55 = vsel %vm904_vm5, %v1310_v50, %v1312_v52  ;;  %v1316_v56 = vsel %vm904_vm5, %v1312_v52, %v1314_v40  ;;  %v1266_v57 = vpop.permute.xlu2 %1265 }
 0x48d   : > { %v1361_v58 = vsel %vm916_vm2, %v1307_v53, %v1315_v55  ;;  %v1365_v59 = vsel %vm916_vm2, %v1308_v54, %v1316_v56  ;;  %v1333_v60 = vsel %vm916_vm2, %v3261_v17, %v1266_v57 }
 0x48e   : > { %1394 = vmatpush.bf16.msrb.mxu2 %v1361_v58  ;;  %1407 = vmatpush.bf16.msrb.mxu3 %v1365_v59 }
 0x48f   : > { %1423 = vmatpush.bf16.msra.mxu0 %v1333_v60 }
 0x492   : > { %2710 = vmatmul.msk.bf16.vlgmr.msra.gmra.mxu0 %vm970_vm8, %v1371_v61 }
 0x493   : > { %v1296_v42 = vpop.permute.xlu1 %1295  ;;  %v1376_v23 = vpop.permute.xlu0 %1375 }
 0x494   : > { %v1299_v0 = vsel %vm886_vm7, %v1294_v48, %v1296_v42  ;;  %v1300_v1 = vsel %vm886_vm7, %v1296_v42, %v1298_v46 }
 0x495   : > { %v1349_v2 = vsel %vm916_vm2, %v1291_v62, %v1299_v0  ;;  %v1353_v3 = vsel %vm916_vm2, %v1292_v63, %v1300_v1 }
 0x496   : > { %1395 = vmatpush.bf16.msrb.mxu2 %v1349_v2  ;;  %1408 = vmatpush.bf16.msrb.mxu3 %v1353_v3 }
 0x49b   : > { %v1280_v5 = vpop.permute.xlu1 %1279 }
 0x49c   : > { %v1283_v8 = vsel %vm868_vm10, %v1278_v4, %v1280_v5  ;;  %v1284_v9 = vsel %vm868_vm10, %v1280_v5, %v1282_v49 }
 0x49d   : > { %v1337_v11 = vsel %vm916_vm2, %v1275_v6, %v1283_v8  ;;  %v1341_v12 = vsel %vm916_vm2, %v1276_v7, %v1284_v9 }
 0x49e   : > { %1396 = vmatpush.bf16.msrb.mxu2 %v1337_v11  ;;  %1409 = vmatpush.bf16.msrb.mxu3 %v1341_v12 }
 0x4a3   : > { %v1264_v17 = vpop.permute.xlu1 %1263 }
 0x4a4   : > { %v1267_v18 = vsel %vm850_vm11, %v1262_v16, %v1264_v17  ;;  %v1268_v19 = vsel %vm850_vm11, %v1264_v17, %v1266_v57 }
 0x4a5   : > { %v1326_v14 = vsel %vm916_vm2, %v3248_v10, %v1267_v18  ;;  %v1330_v22 = vsel %vm916_vm2, %v3257_v15, %v1268_v19 }
 0x4a6   : > { %1397 = vmatpush.bf16.msrb.mxu2 %v1326_v14  ;;  %1410 = vmatpush.bf16.msrb.mxu3 %v1330_v22 }
 0x4a9   : > { %2708 = vmatmul.msk.bf16.vlgmr.msrb.gmra.mxu2 %vm970_vm8, %v1371_v61  ;;  %2709 = vmatmul.msk.bf16.vlgmr.msrb.gmra.mxu3 %vm970_vm8, %v1371_v61 }
 0x50f   : > { %v1425_v13 = vpop.f32.mrf.mxu0 }
 0x510   : > { %v1426_v24 = vadd.f32 %v1425_v13, %v1376_v23 }
 0x512   : > { %v1431_v25 = vadd.f32 %v1426_v24, %v3142_v30 }
 0x514   : > { %v1434_v29 = vmax.f32 %v1431_v25, 0.0 }
 0x516   : > { %v3341_v31 = vmul.f32 %v1434_v29, %v3131_v26 }
 0x517   : > { %v1427_v32 = vpop.f32.mrf.mxu0 }
 0x518   : > { %v1439_v10 = vpack.c.bf16 %v3341_v31, %v3341_v31  ;;  %v1576_v32 = vld [vmem:[%s3966_s10] sm:$0xff]  ;;  %s3974_s10 = smov 11  }
 0x51a   : > { %v1444_v15 = vunpack.c.l.b16 %v1439_v10 }
 0x51c   : > { %v1447_v33 = vpack.c.b16 %v1444_v15, %v1444_v15 }
 0x51e   : > { %1452 = vrot.lane.b32.xlu2 %v1447_v33, %s2861_s1 }
 0x52c   : > { %v1399_v34 = vpop.f32.mrf.mxu2  ;;  %v1412_v35 = vpop.f32.mrf.mxu3 }
 0x52d   : > { %v1400_v36 = vadd.f32 %v1399_v34, %v1376_v23  ;;  %v1413_v37 = vadd.f32 %v1412_v35, %v1376_v23 }
 0x52f   : > { %v1429_v38 = vadd.f32 %v1400_v36, %v3134_v27  ;;  %v1430_v30 = vadd.f32 %v1413_v37, %v3137_v28 }
 0x531   : > { %v1432_v39 = vmax.f32 %v1429_v38, 0.0  ;;  %v1433_v40 = vmax.f32 %v1430_v30, 0.0 }
 0x533   : > { %v3349_v41 = vmul.f32 %v1432_v39, %v3127_v20  ;;  %v3352_v44 = vmul.f32 %v1433_v40, %v3129_v21 }
 0x534   : > { %v1401_v45 = vpop.f32.mrf.mxu2  ;;  %v1414_v46 = vpop.f32.mrf.mxu3 }
 0x535   : > { %v1438_v43 = vpack.c.bf16 %v3352_v44, %v3349_v41 }
 0x537   : > { %v1443_v47 = vunpack.c.h.b16 %v1438_v43  ;;  %v1442_v49 = vunpack.c.l.b16 %v1438_v43 }
 0x539   : > { %v1446_v50 = vpack.c.b16 %v1443_v47, %v1443_v47  ;;  %v1445_v51 = vpack.c.b16 %v1442_v49, %v1442_v49 }
 0x53b   : > { %1450 = vrot.lane.b32.xlu1 %v1446_v50, %s2861_s1  ;;  %1448 = vrot.lane.b32.xlu0 %v1445_v51, %s2861_s1  ;;  %v1575_v51 = vld [vmem:[%s3967_s5] sm:$0xf]  ;;  %s2876_s5 = smov 106  }
 0x578   : > { %v1453_v54 = vpop.permute.xlu2 %1452 }
 0x5ad   : > { %v1451_v27 = vpop.permute.xlu1 %1450  ;;  %v1449_v28 = vpop.permute.xlu0 %1448 }
 0x5ae   : > { %v3359_v52 = vsel %vm829_vm0, %v1449_v28, %v1451_v27  ;;  %v3368_v53 = vsel %vm829_vm0, 0, %v1449_v28  ;;  %v1455_v55 = vsel %vm829_vm0, %v1451_v27, %v1453_v54 }
 0x5af   : > { %1491 = vrot.lane.b32.xlu2 %v3359_v52, %s2864_s28  ;;  %1507 = vrot.lane.b32.xlu0 %v3359_v52, %s2862_s3  ;;  %v3378_v56 = vsel %vm836_vm1, %v1455_v55, 0  ;;  %v1463_v57 = vrot.slane %v3359_v52, 4  ;;  %v1462_v59 = vrot.slane %v3368_v53, 4 }
 0x5b0   : > { %1523 = vrot.lane.b32.xlu1 %v3359_v52, %s2863_s7  ;;  %v1464_v58 = vrot.slane %v3378_v56, 4 }
 0x5b7   : > { %1475 = vrot.lane.b32.xlu2 %v3359_v52, %s3937_s4  ;;  %1505 = vrot.lane.b32.xlu0 %v3368_v53, %s2862_s3 }
 0x5b8   : > { %1521 = vrot.lane.b32.xlu1 %v3368_v53, %s2863_s7 }
 0x5bf   : > { %1525 = vrot.lane.b32.xlu2 %v3378_v56, %s2863_s7  ;;  %1493 = vrot.lane.b32.xlu0 %v3378_v56, %s2864_s28 }
 0x5c0   : > { %1509 = vrot.lane.b32.xlu1 %v3378_v56, %s2862_s3 }
 0x5c7   : > { %1477 = vrot.lane.b32.xlu0 %v3378_v56, %s3937_s4  ;;  %1515 = vrot.lane.b32.xlu2 %v1463_v57, %s2866_s29 }
 0x5c8   : > { %1499 = vrot.lane.b32.xlu1 %v1463_v57, %s3945_s0 }
 0x5cf   : > { %1517 = vrot.lane.b32.xlu0 %v1464_v58, %s2866_s29  ;;  %1467 = vrot.lane.b32.xlu2 %v1463_v57, %s2869_s30 }
 0x5d0   : > { %1513 = vrot.lane.b32.xlu1 %v1462_v59, %s2866_s29 }
 0x5d7   : > { %1489 = vrot.lane.b32.xlu0 %v3368_v53, %s2864_s28  ;;  %1501 = vrot.lane.b32.xlu2 %v1464_v58, %s3945_s0 }
 0x5d8   : > { %1483 = vrot.lane.b32.xlu1 %v1463_v57, %s2868_s9 }
 0x5df   : > { %1469 = vrot.lane.b32.xlu0 %v1464_v58, %s2869_s30  ;;  %1485 = vrot.lane.b32.xlu2 %v1464_v58, %s2868_s9 }
 0x5e0   : > { %1497 = vrot.lane.b32.xlu1 %v1462_v59, %s3945_s0 }
 0x5e7   : > { %1465 = vrot.lane.b32.xlu0 %v1462_v59, %s2869_s30  ;;  %1481 = vrot.lane.b32.xlu2 %v1462_v59, %s2868_s9 }
 0x5e8   : > { %1473 = vrot.lane.b32.xlu1 %v3368_v53, %s3937_s4 }
 0x5f0   : > { %1579 = vperm.xlu1 %2814, %v1576_v32  }
 0x609   : > { %v1492_v60 = vpop.permute.xlu2 %1491 }
 0x611   : > { %v3407_v48 = vpop.permute.xlu2 %1475 }
 0x619   : > { %v1526_v61 = vpop.permute.xlu2 %1525 }
 0x61a   : > { %v1592_v42 = vsel %vm916_vm2, %v1526_v61, 0 }
 0x61b   : > { %1623 = vmatpush.bf16.msra.mxu3 %v1592_v42 }
 0x621   : > { %v1508_v62 = vpop.permute.xlu0 %1507  ;;  %v1516_v2 = vpop.permute.xlu2 %1515 }
 0x622   : > { %v1524_v63 = vpop.permute.xlu1 %1523 }
 0x623   : > { %v1528_v0 = vsel %vm913_vm3, %v1524_v63, %v1526_v61 }
 0x624   : > { %v1589_v1 = vsel %vm916_vm2, %v1528_v0, 0 }
 0x625   : > { %1610 = vmatpush.bf16.msra.mxu2 %v1589_v1 }
 0x629   : > { %v1506_v3 = vpop.permute.xlu0 %1505  ;;  %v1468_v9 = vpop.permute.xlu2 %1467 }
 0x62a   : > { %v1522_v4 = vpop.permute.xlu1 %1521  ;;  %v1511_v23 = vsel %vm895_vm4, %v1506_v3, %v1508_v62 }
 0x62b   : > { %v1527_v5 = vsel %vm913_vm3, %v1522_v4, %v1524_v63 }
 0x62c   : > { %v1586_v6 = vsel %vm916_vm2, %v1527_v5, 0 }
 0x62d   : > { %1597 = vmatpush.bf16.msra.mxu1 %v1586_v6 }
 0x631   : > { %v1494_v7 = vpop.permute.xlu0 %1493  ;;  %v1502_v16 = vpop.permute.xlu2 %1501 }
 0x632   : > { %v1510_v8 = vpop.permute.xlu1 %1509  ;;  %v1496_v10 = vsel %vm877_vm6, %v1492_v60, %v1494_v7  ;;  %v1561_v15 = vsel %vm916_vm2, %v1494_v7, %v1502_v16 }
 0x633   : > { %v1512_v18 = vsel %vm895_vm4, %v1508_v62, %v1510_v8 }
 0x639   : > { %v1478_v11 = vpop.permute.xlu0 %1477  ;;  %v1486_v33 = vpop.permute.xlu2 %1485 }
 0x63a   : > { %v1500_v12 = vpop.permute.xlu1 %1499  ;;  %v1549_v37 = vsel %vm916_vm2, %v1478_v11, %v1486_v33  ;;  %v1480_v38 = vsel %vm859_vm9, %v3407_v48, %v1478_v11 }
 0x63b   : > { %v1504_v25 = vsel %vm886_vm7, %v1500_v12, %v1502_v16 }
 0x63c   : > { %v1557_v34 = vsel %vm916_vm2, %v1496_v10, %v1504_v25 }
 0x641   : > { %v1518_v17 = vpop.permute.xlu0 %1517  ;;  %v1482_v28 = vpop.permute.xlu2 %1481 }
 0x642   : > { %v1520_v19 = vsel %vm904_vm5, %v1516_v2, %v1518_v17  ;;  %v1514_v14 = vpop.permute.xlu1 %1513  ;;  %v1573_v22 = vsel %vm916_vm2, %v1510_v8, %v1518_v17 }
 0x643   : > { %v1519_v13 = vsel %vm904_vm5, %v1514_v14, %v1516_v2  ;;  %1624 = vmatpush.bf16.msra.mxu3 %v1573_v22  ;;  %v1569_v24 = vsel %vm916_vm2, %v1512_v18, %v1520_v19 }
 0x644   : > { %v1565_v29 = vsel %vm916_vm2, %v1511_v23, %v1519_v13  ;;  %1611 = vmatpush.bf16.msra.mxu2 %v1569_v24 }
 0x645   : > { %1598 = vmatpush.bf16.msra.mxu1 %v1565_v29 }
 0x647   : > { %1625 = vmatpush.bf16.msra.mxu3 %v1561_v15 }
 0x648   : > { %1612 = vmatpush.bf16.msra.mxu2 %v1557_v34  ;;  %v1777_v34 = vld [vmem:[%s3968_s2] sm:$0xff]  ;;  %s3971_s2 = smov 126  }
 0x649   : > { %v1490_v35 = vpop.permute.xlu0 %1489 }
 0x64a   : > { %v1484_v36 = vpop.permute.xlu1 %1483  ;;  %v1495_v47 = vsel %vm877_vm6, %v1490_v35, %v1492_v60 }
 0x64b   : > { %v1488_v30 = vsel %vm868_vm10, %v1484_v36, %v1486_v33  ;;  %1626 = vmatpush.bf16.msra.mxu3 %v1549_v37 }
 0x64c   : > { %v1545_v39 = vsel %vm916_vm2, %v1480_v38, %v1488_v30 }
 0x64d   : > { %1613 = vmatpush.bf16.msra.mxu2 %v1545_v39 }
 0x651   : > { %v1470_v40 = vpop.permute.xlu0 %1469 }
 0x652   : > { %v1472_v45 = vsel %vm850_vm11, %v1468_v9, %v1470_v40  ;;  %v1498_v46 = vpop.permute.xlu1 %1497  ;;  %v1537_v43 = vsel %vm916_vm2, %v3378_v56, %v1470_v40  ;;  %v1487_v56 = vsel %vm868_vm10, %v1482_v28, %v1484_v36 }
 0x653   : > { %v1503_v49 = vsel %vm886_vm7, %v1498_v46, %v1500_v12  ;;  %1627 = vmatpush.bf16.msra.mxu3 %v1537_v43  ;;  %v1534_v50 = vsel %vm916_vm2, %v3359_v52, %v1472_v45 }
 0x654   : > { %v1553_v27 = vsel %vm916_vm2, %v1495_v47, %v1503_v49  ;;  %1614 = vmatpush.bf16.msra.mxu2 %v1534_v50 }
 0x655   : > { %1599 = vmatpush.bf16.msra.mxu1 %v1553_v27 }
 0x656   : > { %2713 = vmatmul.msk.bf16.vlgmr.msra.gmra.mxu3 %vm970_vm8, %v1575_v51 }
 0x657   : > { %2712 = vmatmul.msk.bf16.vlgmr.msra.gmra.mxu2 %vm970_vm8, %v1575_v51 }
 0x659   : > { %v1466_v54 = vpop.permute.xlu0 %1465 }
 0x65a   : > { %v1474_v55 = vpop.permute.xlu1 %1473  ;;  %v1471_v58 = vsel %vm850_vm11, %v1466_v54, %v1468_v9 }
 0x65b   : > { %v1479_v52 = vsel %vm859_vm9, %v1474_v55, %v3407_v48  ;;  %v1530_v59 = vsel %vm916_vm2, %v3368_v53, %v1471_v58 }
 0x65c   : > { %v1541_v57 = vsel %vm916_vm2, %v1479_v52, %v1487_v56 }
 0x65d   : > { %1600 = vmatpush.bf16.msra.mxu1 %v1541_v57 }
 0x661   : > { %1601 = vmatpush.bf16.msra.mxu1 %v1530_v59 }
 0x662   : > { %v1580_v60 = vpop.permute.xlu1 %1579 }
 0x664   : > { %2711 = vmatmul.msk.bf16.vlgmr.msra.gmra.mxu1 %vm970_vm8, %v1575_v51 }
 0x6d9   : > { %v1629_v61 = vpop.f32.mrf.mxu3 }
 0x6da   : > { %v1630_v42 = vadd.f32 %v1629_v61, %v1580_v60  ;;  %v1616_v62 = vpop.f32.mrf.mxu2 }
 0x6db   : > { %v1617_v0 = vadd.f32 %v1616_v62, %v1580_v60 }
 0x6dc   : > { %v1635_v63 = vmax.f32 %v1630_v42, 0.0 }
 0x6dd   : > { %v1634_v2 = vmax.f32 %v1617_v0, 0.0 }
 0x6de   : > { %v1638_v1 = vmul.f32 %v1635_v63, %v3131_v26 }
 0x6df   : > { %v1637_v53 = vmul.f32 %v1634_v2, %v3129_v21 }
 0x6e0   : > { %v1640_v48 = vpack.c.bf16 %v1638_v1, %v1638_v1 }
 0x6e1   : > { %v1603_v3 = vpop.f32.mrf.mxu1  ;;  %v1631_v4 = vpop.f32.mrf.mxu3 }
 0x6e2   : > { %v1645_v5 = vunpack.c.l.b16 %v1640_v48  ;;  %v1604_v6 = vadd.f32 %v1603_v3, %v1580_v60  ;;  %v1618_v7 = vpop.f32.mrf.mxu2 }
 0x6e4   : > { %v1633_v8 = vmax.f32 %v1604_v6, 0.0  ;;  %v1648_v9 = vpack.c.b16 %v1645_v5, %v1645_v5 }
 0x6e6   : > { %v1636_v11 = vmul.f32 %v1633_v8, %v3127_v20  ;;  %1653 = vrot.lane.b32.xlu0 %v1648_v9, %s2861_s1 }
 0x6e8   : > { %v1639_v12 = vpack.c.bf16 %v1637_v53, %v1636_v11 }
 0x6e9   : > { %v1605_v16 = vpop.f32.mrf.mxu1 }
 0x6ea   : > { %v1644_v17 = vunpack.c.h.b16 %v1639_v12  ;;  %v1643_v18 = vunpack.c.l.b16 %v1639_v12 }
 0x6ec   : > { %v1647_v19 = vpack.c.b16 %v1644_v17, %v1644_v17  ;;  %v1646_v14 = vpack.c.b16 %v1643_v18, %v1643_v18 }
 0x6ee   : > { %1651 = vrot.lane.b32.xlu2 %v1647_v19, %s2861_s1  ;;  %1649 = vrot.lane.b32.xlu1 %v1646_v14, %s2861_s1 }
 0x748   : > { %v1652_v22 = vpop.permute.xlu2 %1651 }
 0x758   : > { %v1654_v23 = vpop.permute.xlu0 %1653 }
 0x759   : > { %v1656_v13 = vsel %vm829_vm0, %v1652_v22, %v1654_v23 }
 0x75a   : > { %v3462_v24 = vsel %vm836_vm1, %v1656_v13, 0  ;;  %v1776_v13 = vld [vmem:[%s3969_s6] sm:$0xf]  ;;  %s3975_s6 = smov 116  }
 0x75b   : > { %1726 = vrot.lane.b32.xlu1 %v3462_v24, %s2863_s7  ;;  %v1665_v10 = vrot.slane %v3462_v24, 4 }
 0x760   : > { %v1650_v25 = vpop.permute.xlu1 %1649 }
 0x761   : > { %v3467_v29 = vsel %vm829_vm0, %v1650_v25, %v1652_v22  ;;  %v3470_v32 = vsel %vm829_vm0, 0, %v1650_v25 }
 0x762   : > { %1722 = vrot.lane.b32.xlu2 %v3470_v32, %s2863_s7  ;;  %1724 = vrot.lane.b32.xlu0 %v3467_v29, %s2863_s7  ;;  %v1663_v15 = vrot.slane %v3470_v32, 4  ;;  %v1664_v33 = vrot.slane %v3467_v29, 4 }
 0x763   : > { %1710 = vrot.lane.b32.xlu1 %v3462_v24, %s2862_s3 }
 0x76a   : > { %1706 = vrot.lane.b32.xlu2 %v3470_v32, %s2862_s3  ;;  %1708 = vrot.lane.b32.xlu0 %v3467_v29, %s2862_s3 }
 0x76b   : > { %1694 = vrot.lane.b32.xlu1 %v3462_v24, %s2864_s28 }
 0x772   : > { %1690 = vrot.lane.b32.xlu2 %v3470_v32, %s2864_s28  ;;  %1692 = vrot.lane.b32.xlu0 %v3467_v29, %s2864_s28 }
 0x773   : > { %1678 = vrot.lane.b32.xlu1 %v3462_v24, %s3937_s4 }
 0x77a   : > { %1674 = vrot.lane.b32.xlu2 %v3470_v32, %s3937_s4  ;;  %1676 = vrot.lane.b32.xlu0 %v3467_v29, %s3937_s4 }
 0x77b   : > { %1718 = vrot.lane.b32.xlu1 %v1665_v10, %s2866_s29 }
 0x782   : > { %1714 = vrot.lane.b32.xlu2 %v1663_v15, %s2866_s29  ;;  %1716 = vrot.lane.b32.xlu0 %v1664_v33, %s2866_s29 }
 0x783   : > { %1702 = vrot.lane.b32.xlu1 %v1665_v10, %s3945_s0 }
 0x78a   : > { %1698 = vrot.lane.b32.xlu2 %v1663_v15, %s3945_s0  ;;  %1700 = vrot.lane.b32.xlu0 %v1664_v33, %s3945_s0 }
 0x78b   : > { %1686 = vrot.lane.b32.xlu1 %v1665_v10, %s2868_s9 }
 0x792   : > { %1682 = vrot.lane.b32.xlu2 %v1663_v15, %s2868_s9  ;;  %1684 = vrot.lane.b32.xlu0 %v1664_v33, %s2868_s9 }
 0x793   : > { %1670 = vrot.lane.b32.xlu1 %v1665_v10, %s2869_s30 }
 0x79a   : > { %1666 = vrot.lane.b32.xlu2 %v1663_v15, %s2869_s30  ;;  %1668 = vrot.lane.b32.xlu0 %v1664_v33, %s2869_s30 }
 0x7a2   : > { %1780 = vperm.xlu2 %2813, %v1777_v34  }
 0x7bc   : > { %v1723_v35 = vpop.permute.xlu2 %1722 }
 0x7c4   : > { %v1707_v38 = vpop.permute.xlu2 %1706 }
 0x7cc   : > { %v1691_v47 = vpop.permute.xlu2 %1690 }
 0x7cd   : > { %v1727_v36 = vpop.permute.xlu1 %1726 }
 0x7ce   : > { %v1793_v37 = vsel %vm916_vm2, %v1727_v36, 0 }
 0x7cf   : > { %1824 = vmatpush.bf16.msrb.mxu2 %v1793_v37 }
 0x7d4   : > { %v1725_v30 = vpop.permute.xlu0 %1724  ;;  %v1675_v51 = vpop.permute.xlu2 %1674 }
 0x7d5   : > { %v1728_v39 = vsel %vm913_vm3, %v1723_v35, %v1725_v30  ;;  %v1729_v40 = vsel %vm913_vm3, %v1725_v30, %v1727_v36  ;;  %v1711_v45 = vpop.permute.xlu1 %1710 }
 0x7d6   : > { %v1787_v46 = vsel %vm916_vm2, %v1728_v39, 0  ;;  %v1790_v43 = vsel %vm916_vm2, %v1729_v40, 0 }
 0x7d7   : > { %1798 = vmatpush.bf16.msrb.mxu0 %v1787_v46  ;;  %1811 = vmatpush.bf16.msrb.mxu1 %v1790_v43 }
 0x7dc   : > { %v1709_v49 = vpop.permute.xlu0 %1708  ;;  %v1715_v56 = vpop.permute.xlu2 %1714 }
 0x7dd   : > { %v1695_v50 = vpop.permute.xlu1 %1694  ;;  %v1712_v58 = vsel %vm895_vm4, %v1707_v38, %v1709_v49  ;;  %v1713_v59 = vsel %vm895_vm4, %v1709_v49, %v1711_v45 }
 0x7e4   : > { %v1693_v27 = vpop.permute.xlu0 %1692  ;;  %v1699_v1 = vpop.permute.xlu2 %1698 }
 0x7e5   : > { %v1679_v28 = vpop.permute.xlu1 %1678  ;;  %v1696_v2 = vsel %vm877_vm6, %v1691_v47, %v1693_v27  ;;  %v1697_v3 = vsel %vm877_vm6, %v1693_v27, %v1695_v50 }
 0x7ec   : > { %v1677_v54 = vpop.permute.xlu0 %1676  ;;  %v1683_v9 = vpop.permute.xlu2 %1682 }
 0x7ed   : > { %v1719_v55 = vpop.permute.xlu1 %1718  ;;  %v1680_v12 = vsel %vm859_vm9, %v1675_v51, %v1677_v54  ;;  %v1681_v16 = vsel %vm859_vm9, %v1677_v54, %v1679_v28 }
 0x7ee   : > { %v1774_v52 = vsel %vm916_vm2, %v1711_v45, %v1719_v55 }
 0x7ef   : > { %1825 = vmatpush.bf16.msrb.mxu2 %v1774_v52 }
 0x7f4   : > { %v1717_v57 = vpop.permute.xlu0 %1716  ;;  %v1667_v25 = vpop.permute.xlu2 %1666 }
 0x7f5   : > { %v1720_v60 = vsel %vm904_vm5, %v1715_v56, %v1717_v57  ;;  %v1721_v61 = vsel %vm904_vm5, %v1717_v57, %v1719_v55  ;;  %v1703_v42 = vpop.permute.xlu1 %1702 }
 0x7f6   : > { %v1766_v62 = vsel %vm916_vm2, %v1712_v58, %v1720_v60  ;;  %v1770_v63 = vsel %vm916_vm2, %v1713_v59, %v1721_v61  ;;  %v1762_v0 = vsel %vm916_vm2, %v1695_v50, %v1703_v42 }
 0x7f7   : > { %1799 = vmatpush.bf16.msrb.mxu0 %v1766_v62  ;;  %1812 = vmatpush.bf16.msrb.mxu1 %v1770_v63 }
 0x7f8   : > { %1826 = vmatpush.bf16.msrb.mxu2 %v1762_v0 }
 0x7fc   : > { %v1701_v48 = vpop.permute.xlu0 %1700  ;;  %v1781_v35 = vpop.permute.xlu2 %1780 }
 0x7fd   : > { %v1704_v4 = vsel %vm886_vm7, %v1699_v1, %v1701_v48  ;;  %v1705_v5 = vsel %vm886_vm7, %v1701_v48, %v1703_v42  ;;  %v1687_v6 = vpop.permute.xlu1 %1686  ;;  %v1983_v1 = vld [vmem:[%s3922_s12] sm:$0xff]  ;;  %v1984_v48 = vld [vmem:[%s3922_s12 + $0x8] sm:$0xff] }
 0x7fe   : > { %v1754_v7 = vsel %vm916_vm2, %v1696_v2, %v1704_v4  ;;  %v1758_v53 = vsel %vm916_vm2, %v1697_v3, %v1705_v5  ;;  %v1750_v8 = vsel %vm916_vm2, %v1679_v28, %v1687_v6 }
 0x7ff   : > { %1800 = vmatpush.bf16.msrb.mxu0 %v1754_v7  ;;  %1813 = vmatpush.bf16.msrb.mxu1 %v1758_v53 }
 0x800   : > { %1827 = vmatpush.bf16.msrb.mxu2 %v1750_v8 }
 0x804   : > { %v1685_v11 = vpop.permute.xlu0 %1684 }
 0x805   : > { %v1688_v17 = vsel %vm868_vm10, %v1683_v9, %v1685_v11  ;;  %v1689_v18 = vsel %vm868_vm10, %v1685_v11, %v1687_v6  ;;  %v1671_v19 = vpop.permute.xlu1 %1670 }
 0x806   : > { %v1742_v14 = vsel %vm916_vm2, %v1680_v12, %v1688_v17  ;;  %v1746_v22 = vsel %vm916_vm2, %v1681_v16, %v1689_v18  ;;  %v1738_v23 = vsel %vm916_vm2, %v3462_v24, %v1671_v19 }
 0x807   : > { %1801 = vmatpush.bf16.msrb.mxu0 %v1742_v14  ;;  %1814 = vmatpush.bf16.msrb.mxu1 %v1746_v22 }
 0x808   : > { %1828 = vmatpush.bf16.msrb.mxu2 %v1738_v23 }
 0x80b   : > { %2716 = vmatmul.msk.bf16.vlgmr.msrb.gmra.mxu2 %vm970_vm8, %v1776_v13 }
 0x80c   : > { %v1669_v10 = vpop.permute.xlu0 %1668 }
 0x80d   : > { %v1672_v15 = vsel %vm850_vm11, %v1667_v25, %v1669_v10  ;;  %v1673_v33 = vsel %vm850_vm11, %v1669_v10, %v1671_v19 }
 0x80e   : > { %v1731_v34 = vsel %vm916_vm2, %v3470_v32, %v1672_v15  ;;  %v1735_v24 = vsel %vm916_vm2, %v3467_v29, %v1673_v33 }
 0x80f   : > { %1802 = vmatpush.bf16.msrb.mxu0 %v1731_v34  ;;  %1815 = vmatpush.bf16.msrb.mxu1 %v1735_v24  ;;  %v3642_v34 = vld [vmem:[#allocation2 + $0x70] sm:$0xff] }
 0x812   : > { %2714 = vmatmul.msk.bf16.vlgmr.msrb.gmra.mxu0 %vm970_vm8, %v1776_v13  ;;  %2715 = vmatmul.msk.bf16.vlgmr.msrb.gmra.mxu1 %vm970_vm8, %v1776_v13  ;;  %v3637_v13 = vld [vmem:[#allocation2 + $0x78] sm:$0xff] }
 0x813   : > { %2105 = vmatpush.msra.mxu2 %v3637_v13 }
 0x815   : > { %2106 = vmatpush.msra.mxu2 %v3642_v34 }
 0x88e   : > { %v1830_v36 = vpop.f32.mrf.mxu2 }
 0x88f   : > { %v1831_v37 = vadd.f32 %v1830_v36, %v1781_v35  ;;  %v1804_v38 = vpop.f32.mrf.mxu0  ;;  %v1817_v30 = vpop.f32.mrf.mxu1 }
 0x890   : > { %v1805_v39 = vadd.f32 %v1804_v38, %v1781_v35  ;;  %v1818_v40 = vadd.f32 %v1817_v30, %v1781_v35  ;;  %v3650_v38 = vld [vmem:[#allocation2 + $0x68] sm:$0xff] }
 0x891   : > { %v1836_v45 = vadd.f32 %v1831_v37, %v3341_v31  ;;  %2107 = vmatpush.msra.mxu2 %v3650_v38 }
 0x892   : > { %v1834_v32 = vadd.f32 %v1805_v39, %v3349_v41  ;;  %v1835_v46 = vadd.f32 %v1818_v40, %v3352_v44  ;;  %v3653_v39 = vld [vmem:[#allocation2 + $0x60] sm:$0xff]  ;;  %v3656_v40 = vld [vmem:[#allocation2 + $0x58] sm:$0xff] }
 0x893   : > { %v1839_v29 = vmax.f32 %v1836_v45, 0.0  ;;  %2108 = vmatpush.msra.mxu2 %v3653_v39 }
 0x894   : > { %v1837_v43 = vmax.f32 %v1834_v32, 0.0  ;;  %v1838_v47 = vmax.f32 %v1835_v46, 0.0 }
 0x895   : > { %v3556_v49 = vmul.f32 %v1839_v29, %v3131_v26  ;;  %2109 = vmatpush.msra.mxu2 %v3656_v40 }
 0x896   : > { %v3559_v50 = vmul.f32 %v1837_v43, %v3127_v20  ;;  %v3562_v51 = vmul.f32 %v1838_v47, %v3129_v21  ;;  %v1832_v27 = vpop.f32.mrf.mxu2  ;;  %v3662_v47 = vld [vmem:[#allocation2 + $0x50] sm:$0xff] }
 0x897   : > { %v1806_v28 = vpop.f32.mrf.mxu0  ;;  %v1819_v54 = vpop.f32.mrf.mxu1  ;;  %v1845_v31 = vpack.c.bf16 %v3556_v49, %v3556_v49  ;;  %2110 = vmatpush.msra.mxu2 %v3662_v47 }
 0x898   : > { %v1844_v41 = vpack.c.bf16 %v3562_v51, %v3559_v50 }
 0x899   : > { %v1850_v44 = vunpack.c.l.b16 %v1845_v31 }
 0x89a   : > { %v1849_v55 = vunpack.c.h.b16 %v1844_v41  ;;  %v1848_v56 = vunpack.c.l.b16 %v1844_v41  ;;  %v3670_v41 = vld [vmem:[#allocation2 + $0x48] sm:$0xff] }
 0x89b   : > { %v1853_v26 = vpack.c.b16 %v1850_v44, %v1850_v44  ;;  %2111 = vmatpush.msra.mxu2 %v3670_v41  ;;  %v3673_v44 = vld [vmem:[#allocation2 + $0x40] sm:$0xff] }
 0x89c   : > { %v1852_v52 = vpack.c.b16 %v1849_v55, %v1849_v55  ;;  %v1851_v57 = vpack.c.b16 %v1848_v56, %v1848_v56  ;;  %v3676_v56 = vld [vmem:[#allocation2 + $0x38] sm:$0xff] }
 0x89d   : > { %1858 = vrot.lane.b32.xlu2 %v1853_v26, %s2861_s1  ;;  %2112 = vmatpush.msra.mxu2 %v3673_v44 }
 0x89e   : > { %1856 = vrot.lane.b32.xlu1 %v1852_v52, %s2861_s1  ;;  %1854 = vrot.lane.b32.xlu0 %v1851_v57, %s2861_s1  ;;  %s3947_s1 = smov 11  }
 0x89f   : > { %2113 = vmatpush.msra.mxu2 %v3676_v56 }
 0x8f7   : > { %v1859_v42 = vpop.permute.xlu2 %1858 }
 0x910   : > { %v1857_v20 = vpop.permute.xlu1 %1856  ;;  %v1855_v21 = vpop.permute.xlu0 %1854 }
 0x911   : > { %v3572_v58 = vsel %vm829_vm0, %v1855_v21, %v1857_v20  ;;  %v3575_v59 = vsel %vm829_vm0, 0, %v1855_v21  ;;  %v1861_v62 = vsel %vm829_vm0, %v1857_v20, %v1859_v42  ;;  %vm2307_vm0 = vcmask 130048  }
 0x912   : > { %1911 = vrot.lane.b32.xlu2 %v3575_v59, %s2862_s3  ;;  %1927 = vrot.lane.b32.xlu0 %v3575_v59, %s2863_s7  ;;  %v1868_v60 = vrot.slane %v3575_v59, 4  ;;  %v1869_v61 = vrot.slane %v3572_v58, 4  ;;  %v3601_v63 = vsel %vm836_vm1, %v1861_v62, 0  ;;  %vm2580_vm1 = vcmask 818176  }
 0x913   : > { %1929 = vrot.lane.b32.xlu1 %v3572_v58, %s2863_s7  ;;  %v1870_v0 = vrot.slane %v3601_v63, 4 }
 0x91a   : > { %1897 = vrot.lane.b32.xlu2 %v3572_v58, %s2864_s28  ;;  %1913 = vrot.lane.b32.xlu0 %v3572_v58, %s2862_s3 }
 0x91b   : > { %1895 = vrot.lane.b32.xlu1 %v3575_v59, %s2864_s28 }
 0x922   : > { %1881 = vrot.lane.b32.xlu2 %v3572_v58, %s3937_s4  ;;  %1903 = vrot.lane.b32.xlu0 %v1868_v60, %s3945_s0 }
 0x923   : > { %1879 = vrot.lane.b32.xlu1 %v3575_v59, %s3937_s4 }
 0x92a   : > { %1887 = vrot.lane.b32.xlu0 %v1868_v60, %s2868_s9  ;;  %1921 = vrot.lane.b32.xlu2 %v1869_v61, %s2866_s29 }
 0x92b   : > { %1919 = vrot.lane.b32.xlu1 %v1868_v60, %s2866_s29 }
 0x932   : > { %1931 = vrot.lane.b32.xlu0 %v3601_v63, %s2863_s7  ;;  %1873 = vrot.lane.b32.xlu2 %v1869_v61, %s2869_s30  ;;  %s3946_s7 = smov 116  }
 0x933   : > { %1905 = vrot.lane.b32.xlu1 %v1869_v61, %s3945_s0 }
 0x93a   : > { %1923 = vrot.lane.b32.xlu0 %v1870_v0, %s2866_s29  ;;  %1915 = vrot.lane.b32.xlu2 %v3601_v63, %s2862_s3  ;;  %s3939_s3 = smov 107   ;;  %s3941_s29 = smov 118  }
 0x93b   : > { %1889 = vrot.lane.b32.xlu1 %v1869_v61, %s2868_s9 }
 0x942   : > { %1907 = vrot.lane.b32.xlu0 %v1870_v0, %s3945_s0  ;;  %1899 = vrot.lane.b32.xlu2 %v3601_v63, %s2864_s28  ;;  %s3943_s28 = smov 117  }
 0x943   : > { %1871 = vrot.lane.b32.xlu1 %v1868_v60, %s2869_s30  ;;  %v3683_v60 = vld [vmem:[#allocation2 + $0x30] sm:$0xff] }
 0x944   : > { %2114 = vmatpush.msra.mxu2 %v3683_v60 }
 0x94a   : > { %1883 = vrot.lane.b32.xlu0 %v3601_v63, %s3937_s4  ;;  %1875 = vrot.lane.b32.xlu2 %v1870_v0, %s2869_s30 }
 0x94b   : > { %1891 = vrot.lane.b32.xlu1 %v1870_v0, %s2868_s9  ;;  %v2766_v0 = vld [vmem:[%s3921_s11] sm:$0xff]  ;;  %s3970_s9 = smov 107  }
 0x952   : > { %1987 = vperm.xlu0 %2812, %v1983_v1   ;;  %v3694_v1 = vld [vmem:[#allocation2 + $0x28] sm:$0xff] }
 0x953   : > { %1992 = vperm.xlu1 %2814, %v1984_v48   ;;  %2115 = vmatpush.msra.mxu2 %v3694_v1  ;;  %v3697_v48 = vld [vmem:[#allocation2 + $0x20] sm:$0xff] }
 0x955   : > { %2116 = vmatpush.msra.mxu2 %v3697_v48 }
 0x96c   : > { %v1912_v2 = vpop.permute.xlu2 %1911 }
 0x974   : > { %v3626_v3 = vpop.permute.xlu2 %1897 }
 0x97c   : > { %v3630_v53 = vpop.permute.xlu2 %1881 }
 0x984   : > { %v1928_v4 = vpop.permute.xlu0 %1927  ;;  %v1922_v11 = vpop.permute.xlu2 %1921 }
 0x985   : > { %v1930_v5 = vpop.permute.xlu1 %1929 }
 0x986   : > { %v1933_v6 = vsel %vm913_vm3, %v1928_v4, %v1930_v5 }
 0x987   : > { %v2004_v7 = vsel %vm916_vm2, %v1933_v6, 0  ;;  %v3706_v6 = vld [vmem:[#allocation2 + $0x10] sm:$0xff] }
 0x988   : > { %2015 = vmatpush.bf16.msrb.mxu3 %v2004_v7 }
 0x98c   : > { %v1914_v8 = vpop.permute.xlu0 %1913  ;;  %v3633_v14 = vpop.permute.xlu2 %1873 }
 0x98d   : > { %v1896_v9 = vpop.permute.xlu1 %1895  ;;  %v1917_v19 = vsel %vm895_vm4, %v1912_v2, %v1914_v8  ;;  %v3701_v2 = vld [vmem:[#allocation2 + $0x18] sm:$0xff] }
 0x98e   : > { %v1901_v24 = vsel %vm877_vm6, %v1896_v9, %v3626_v3  ;;  %2117 = vmatpush.msra.mxu2 %v3701_v2 }
 0x990   : > { %2118 = vmatpush.msra.mxu2 %v3706_v6 }
 0x994   : > { %v1904_v12 = vpop.permute.xlu0 %1903  ;;  %v1916_v30 = vpop.permute.xlu2 %1915 }
 0x995   : > { %v1880_v16 = vpop.permute.xlu1 %1879  ;;  %v1918_v32 = vsel %vm895_vm4, %v1914_v8, %v1916_v30 }
 0x996   : > { %v1885_v27 = vsel %vm859_vm9, %v1880_v16, %v3630_v53 }
 0x99c   : > { %v1888_v17 = vpop.permute.xlu0 %1887  ;;  %v1900_v55 = vpop.permute.xlu2 %1899 }
 0x99d   : > { %v1920_v18 = vpop.permute.xlu1 %1919  ;;  %v1902_v52 = vsel %vm877_vm6, %v3626_v3, %v1900_v55 }
 0x99e   : > { %v1925_v22 = vsel %vm904_vm5, %v1920_v18, %v1922_v11  ;;  %v2085_v18 = vld [vmem:[#allocation2 + $0xf8] sm:$0xff] }
 0x99f   : > { %v1971_v23 = vsel %vm916_vm2, %v1917_v19, %v1925_v22  ;;  %v2084_v19 = vld [vmem:[#allocation2 + $0xf0] sm:$0xff]  ;;  %v3730_v22 = vld [vmem:[#allocation2 + $0x138] sm:$0xff] }
 0x9a0   : > { %2016 = vmatpush.bf16.msrb.mxu3 %v1971_v23  ;;  %v3735_v23 = vld [vmem:[#allocation2 + $0x130] sm:$0xff] }
 0x9a4   : > { %v1932_v25 = vpop.permute.xlu0 %1931 }
 0x9a5   : > { %v1934_v10 = vsel %vm913_vm3, %v1930_v5, %v1932_v25  ;;  %v2010_v15 = vsel %vm916_vm2, %v1932_v25, 0  ;;  %v1906_v33 = vpop.permute.xlu1 %1905  ;;  %v3739_v25 = vld [vmem:[#allocation2 + $0x128] sm:$0xff] }
 0x9a6   : > { %v2007_v35 = vsel %vm916_vm2, %v1934_v10, 0  ;;  %v1909_v36 = vsel %vm886_vm7, %v1904_v12, %v1906_v33  ;;  %2043 = vmatpush.bf16.msra.mxu1 %v2010_v15  ;;  %v2080_v10 = vld [vmem:[#allocation2 + $0xd0] sm:$0xff]  ;;  %v2090_v15 = vld [vmem:[#allocation2 + $0x120] sm:$0xff] }
 0x9a7   : > { %v1959_v37 = vsel %vm916_vm2, %v1901_v24, %v1909_v36  ;;  %2029 = vmatpush.bf16.msra.mxu0 %v2007_v35  ;;  %v2077_v24 = vld [vmem:[#allocation2 + $0xb8] sm:$0xff]  ;;  %v2076_v35 = vld [vmem:[#allocation2 + $0xb0] sm:$0xff]  ;;  %v2075_v36 = vld [vmem:[#allocation2 + $0xa8] sm:$0xff] }
 0x9a8   : > { %2017 = vmatpush.bf16.msrb.mxu3 %v1959_v37  ;;  %v2074_v37 = vld [vmem:[#allocation2 + $0xa0] sm:$0xff] }
 0x9ac   : > { %v1924_v45 = vpop.permute.xlu0 %1923 }
 0x9ad   : > { %v1926_v46 = vsel %vm904_vm5, %v1922_v11, %v1924_v45  ;;  %v1890_v29 = vpop.permute.xlu1 %1889  ;;  %v1979_v43 = vsel %vm916_vm2, %v1916_v30, %v1924_v45  ;;  %v3712_v11 = vld [vmem:[#allocation2 + $0x8] sm:$0xff]  ;;  %v2089_v30 = vld [vmem:[#allocation2 + $0x118] sm:$0xff] }
 0x9ae   : > { %v1893_v28 = vsel %vm868_vm10, %v1888_v17, %v1890_v29  ;;  %2044 = vmatpush.bf16.msra.mxu1 %v1979_v43  ;;  %v1975_v54 = vsel %vm916_vm2, %v1918_v32, %v1926_v46  ;;  %2119 = vmatpush.msra.mxu2 %v3712_v11  ;;  %v2071_v45 = vld [vmem:[#allocation2 + $0x88] sm:$0xff]  ;;  %v2070_v46 = vld [vmem:[#allocation2 + $0x80] sm:$0xff] }
 0x9af   : > { %v1947_v31 = vsel %vm916_vm2, %v1885_v27, %v1893_v28  ;;  %2030 = vmatpush.bf16.msra.mxu0 %v1975_v54  ;;  %v2087_v32 = vld [vmem:[#allocation2 + $0x108] sm:$0xff] }
 0x9b0   : > { %2018 = vmatpush.bf16.msrb.mxu3 %v1947_v31 }
 0x9b4   : > { %v1908_v26 = vpop.permute.xlu0 %1907 }
 0x9b5   : > { %v1910_v57 = vsel %vm886_vm7, %v1906_v33, %v1908_v26  ;;  %v1872_v20 = vpop.permute.xlu1 %1871  ;;  %v1967_v21 = vsel %vm916_vm2, %v1900_v55, %v1908_v26  ;;  %v2079_v33 = vld [vmem:[#allocation2 + $0xc8] sm:$0xff] }
 0x9b6   : > { %v1877_v61 = vsel %vm850_vm11, %v1872_v20, %v3633_v14  ;;  %2045 = vmatpush.bf16.msra.mxu1 %v1967_v21  ;;  %v1963_v42 = vsel %vm916_vm2, %v1902_v52, %v1910_v57 }
 0x9b7   : > { %v1936_v62 = vsel %vm916_vm2, %v3575_v59, %v1877_v61  ;;  %2031 = vmatpush.bf16.msra.mxu0 %v1963_v42  ;;  %v1876_v59 = vpop.permute.xlu2 %1875 }
 0x9b8   : > { %2019 = vmatpush.bf16.msrb.mxu3 %v1936_v62  ;;  %v1878_v12 = vsel %vm850_vm11, %v3633_v14, %v1876_v59  ;;  %v1943_v16 = vsel %vm916_vm2, %v3601_v63, %v1876_v59  ;;  %v3726_v14 = vld [vmem:[#allocation2 + $0x140] sm:$0xf]  ;;  %v2083_v63 = vld [vmem:[#allocation2 + $0xe8] sm:$0xff] }
 0x9b9   : > { %v1940_v17 = vsel %vm916_vm2, %v3572_v58, %v1878_v12  ;;  %v2082_v58 = vld [vmem:[#allocation2 + $0xe0] sm:$0xff] }
 0x9bb   : > { %2721 = vmatmul.msk.bf16.vlgmr.msrb.gmra.mxu3 %vm970_vm8, %v2766_v0 }
 0x9bc   : > { %v1884_v3 = vpop.permute.xlu0 %1883  ;;  %2128 = vmatpush.msra.mxu3 %v2085_v18 }
 0x9bd   : > { %v1886_v4 = vsel %vm859_vm9, %v3630_v53, %v1884_v3  ;;  %v1892_v5 = vpop.permute.xlu1 %1891  ;;  %v3717_v53 = vld [vmem:[#allocation2] sm:$0xff] }
 0x9be   : > { %v1894_v7 = vsel %vm868_vm10, %v1890_v29, %v1892_v5  ;;  %v1955_v8 = vsel %vm916_vm2, %v1884_v3, %v1892_v5  ;;  %2120 = vmatpush.msra.mxu2 %v3717_v53  ;;  %2129 = vmatpush.msra.mxu3 %v2084_v19  ;;  %v2086_v29 = vld [vmem:[#allocation2 + $0x100] sm:$0xff] }
 0x9bf   : > { %2046 = vmatpush.bf16.msra.mxu1 %v1955_v8  ;;  %v1951_v9 = vsel %vm916_vm2, %v1886_v4, %v1894_v7 }
 0x9c0   : > { %2032 = vmatpush.bf16.msra.mxu0 %v1951_v9  ;;  %2197 = vmatpush.msrb.mxu2 %v2085_v18 }
 0x9c1   : > { %2130 = vmatpush.msra.mxu3 %v2083_v63 }
 0x9c2   : > { %2198 = vmatpush.msrb.mxu2 %v2084_v19 }
 0x9c3   : > { %2047 = vmatpush.bf16.msra.mxu1 %v1943_v16  ;;  %2131 = vmatpush.msra.mxu3 %v2082_v58 }
 0x9c4   : > { %2033 = vmatpush.bf16.msra.mxu0 %v1940_v17  ;;  %2199 = vmatpush.msrb.mxu2 %v2083_v63 }
 0x9c6   : > { %2723 = vmatmul.msk.bf16.vlgmr.msra.gmra.mxu1 %vm970_vm8, %v2766_v0  ;;  %2200 = vmatpush.msrb.mxu2 %v2082_v58 }
 0x9c7   : > { %2177 = vmatpush.msrb.mxu1 %v3637_v13  ;;  %2722 = vmatmul.msk.bf16.vlgmr.msra.gmra.mxu0 %vm970_vm8, %v2766_v0  ;;  %v2081_v13 = vld [vmem:[#allocation2 + $0xd8] sm:$0xff] }
 0x9c8   : > { %2724 = vmatpush.msk.msrb.mxu0 %vm916_vm2, %v3726_v14  ;;  %2132 = vmatpush.msra.mxu3 %v2081_v13 }
 0x9c9   : > { %2178 = vmatpush.msrb.mxu1 %v3642_v34  ;;  %2201 = vmatpush.msrb.mxu2 %v2081_v13  ;;  %v2078_v34 = vld [vmem:[#allocation2 + $0xc0] sm:$0xff]  ;;  %v2343_v13 = vld [vmem:[%s3926_s16 + $0x8] sm:$0xff] }
 0x9ca   : > { %2159 = vmatpush.msrb.mxu0 %v3730_v22  ;;  %2133 = vmatpush.msra.mxu3 %v2080_v10 }
 0x9cb   : > { %2179 = vmatpush.msrb.mxu1 %v3650_v38  ;;  %2202 = vmatpush.msrb.mxu2 %v2080_v10  ;;  %v2073_v38 = vld [vmem:[#allocation2 + $0x98] sm:$0xff]  ;;  %v2287_v10 = vld [vmem:[%s3924_s14 + $0x8] sm:$0xff] }
 0x9cc   : > { %2160 = vmatpush.msrb.mxu0 %v3735_v23  ;;  %2134 = vmatpush.msra.mxu3 %v2079_v33 }
 0x9cd   : > { %2180 = vmatpush.msrb.mxu1 %v3653_v39  ;;  %2203 = vmatpush.msrb.mxu2 %v2079_v33  ;;  %v2072_v39 = vld [vmem:[#allocation2 + $0x90] sm:$0xff] }
 0x9ce   : > { %2161 = vmatpush.msrb.mxu0 %v3739_v25  ;;  %2135 = vmatpush.msra.mxu3 %v2078_v34 }
 0x9cf   : > { %2181 = vmatpush.msrb.mxu1 %v3656_v40  ;;  %2204 = vmatpush.msrb.mxu2 %v2078_v34  ;;  %v2088_v40 = vld [vmem:[#allocation2 + $0x110] sm:$0xff] }
 0x9d0   : > { %2162 = vmatpush.msrb.mxu0 %v2090_v15  ;;  %2136 = vmatpush.msra.mxu3 %v2077_v24 }
 0x9d1   : > { %2182 = vmatpush.msrb.mxu1 %v3662_v47  ;;  %2205 = vmatpush.msrb.mxu2 %v2077_v24 }
 0x9d2   : > { %2137 = vmatpush.msra.mxu3 %v2076_v35  ;;  %2163 = vmatpush.msrb.mxu0 %v2089_v30 }
 0x9d3   : > { %2183 = vmatpush.msrb.mxu1 %v3670_v41  ;;  %2206 = vmatpush.msrb.mxu2 %v2076_v35  ;;  %v1993_v41 = vpop.permute.xlu1 %1992 }
 0x9d4   : > { %2138 = vmatpush.msra.mxu3 %v2075_v36  ;;  %2164 = vmatpush.msrb.mxu0 %v2088_v40 }
 0x9d5   : > { %2184 = vmatpush.msrb.mxu1 %v3673_v44  ;;  %2207 = vmatpush.msrb.mxu2 %v2075_v36  ;;  %v2767_v36 = vld [vmem:[%s3923_s13 + $0x4] sm:$0xf] }
 0x9d6   : > { %2139 = vmatpush.msra.mxu3 %v2074_v37  ;;  %2165 = vmatpush.msrb.mxu0 %v2087_v32 }
 0x9d7   : > { %2185 = vmatpush.msrb.mxu1 %v3676_v56  ;;  %2208 = vmatpush.msrb.mxu2 %v2074_v37  ;;  %v2733_v37 = vld [vmem:[%s3923_s13 + $0x8] sm:$0xf0] }
 0x9d8   : > { %2140 = vmatpush.msra.mxu3 %v2073_v38  ;;  %2166 = vmatpush.msrb.mxu0 %v2086_v29 }
 0x9d9   : > { %2186 = vmatpush.msrb.mxu1 %v3683_v60  ;;  %2209 = vmatpush.msrb.mxu2 %v2073_v38 }
 0x9da   : > { %2141 = vmatpush.msra.mxu3 %v2072_v39 }
 0x9db   : > { %2187 = vmatpush.msrb.mxu1 %v3694_v1  ;;  %2210 = vmatpush.msrb.mxu2 %v2072_v39  ;;  %v3769_v1 = vld [vmem:[%s3934_s24] ss:$0 sm:$0xff] }
 0x9dc   : > { %2142 = vmatpush.msra.mxu3 %v2071_v45 }
 0x9dd   : > { %2188 = vmatpush.msrb.mxu1 %v3697_v48  ;;  %2211 = vmatpush.msrb.mxu2 %v2071_v45  ;;  %v2731_v45 = vld [vmem:[%s3923_s13] sm:$0xf] }
 0x9de   : > { %2143 = vmatpush.msra.mxu3 %v2070_v46 }
 0x9df   : > { %2189 = vmatpush.msrb.mxu1 %v3701_v2  ;;  %2212 = vmatpush.msrb.mxu2 %v2070_v46 }
 0x9e0   : > { %2727 = vmatpush.msk.msrb.mxu3 %vm916_vm2, %v3726_v14  ;;  %v2769_v14 = vld [vmem:[%s3925_s15] sm:$0xff] }
 0x9e1   : > { %2190 = vmatpush.msrb.mxu1 %v3706_v6 }
 0x9e2   : > { %2225 = vmatpush.msrb.mxu3 %v3730_v22 }
 0x9e3   : > { %2191 = vmatpush.msrb.mxu1 %v3712_v11 }
 0x9e4   : > { %2226 = vmatpush.msrb.mxu3 %v3735_v23  ;;  %v2286_v23 = vld [vmem:[%s3924_s14] sm:$0xff] }
 0x9e5   : > { %2192 = vmatpush.msrb.mxu1 %v3717_v53 }
 0x9e6   : > { %2193 = vmatmul.f32.vlgmr.msrb.gmra.mxu1 %v3559_v50  ;;  %2227 = vmatpush.msrb.mxu3 %v3739_v25  ;;  %v1988_v50 = vpop.permute.xlu0 %1987  ;;  %v2342_v25 = vld [vmem:[%s3926_s16] sm:$0xff] }
 0x9e8   : > { %2228 = vmatpush.msrb.mxu3 %v2090_v15 }
 0x9ea   : > { %2229 = vmatpush.msrb.mxu3 %v2089_v30  ;;  %v2736_v30 = vor.u32 %v2767_v36, %v2733_v37 }
 0x9ec   : > { %2230 = vmatpush.msrb.mxu3 %v2088_v40 }
 0x9ee   : > { %2231 = vmatpush.msrb.mxu3 %v2087_v32  ;;  %v2768_v32 = vld [vmem:[%s3923_s13 + $0x4] sm:$0xf0] }
 0x9ef   : > { %v2732_v46 = vor.u32 %v2768_v32, %v2731_v45 }
 0x9f0   : > { %2232 = vmatpush.msrb.mxu3 %v2086_v29 }
 0xa3e   : > { %v2021_v43 = vpop.f32.mrf.mxu3 }
 0xa3f   : > { %v2022_v47 = vadd.f32 %v2021_v43, %v1988_v50 }
 0xa41   : > { %2121 = vmatmul.f32.vlgmr.msra.gmra.mxu2 %v2022_v47 }
 0xa43   : > { %v2049_v27 = vpop.f32.mrf.mxu1 }
 0xa44   : > { %v2050_v28 = vadd.f32 %v2049_v27, %v1988_v50  ;;  %v2035_v54 = vpop.f32.mrf.mxu0 }
 0xa45   : > { %v2036_v31 = vadd.f32 %v2035_v54, %v1988_v50 }
 0xa46   : > { %v2023_v44 = vpop.f32.mrf.mxu3  ;;  %2725 = vmatmul.msk.f32.vlgmr.msrb.gmra.mxu0 %vm2095_vm12, %v2050_v28 }
 0xa47   : > { %v2024_v55 = vadd.f32 %v2023_v44, %v1993_v41  ;;  %2144 = vmatmul.f32.vlgmr.msra.gmra.mxu3 %v2036_v31 }
 0xa49   : > { %2124 = vmatmul.f32.gmra.mxu2 %v2024_v55 }
 0xa4b   : > { %v2051_v56 = vpop.f32.mrf.mxu1 }
 0xa4c   : > { %v2052_v26 = vadd.f32 %v2051_v56, %v1993_v41  ;;  %v2037_v52 = vpop.f32.mrf.mxu0 }
 0xa4d   : > { %v2038_v57 = vadd.f32 %v2037_v52, %v1993_v41 }
 0xa4e   : > { %2726 = vmatmul.msk.f32.gmra.mxu0 %vm2095_vm12, %v2052_v26 }
 0xa4f   : > { %2147 = vmatmul.f32.gmra.mxu3 %v2038_v57 }
 0xa51   : > { %2213 = vmatmul.f32.vlgmr.msrb.gmra.mxu2 %v3562_v51 }
 0xa57   : > { %2728 = vmatmul.msk.f32.vlgmr.msrb.gmra.mxu3 %vm2095_vm12, %v3556_v49 }
 0xa63   : > { %v2194_v5 = vpop.f32.mrf.mxu1 }
 0xac3   : > { %v2168_v21 = vpop.f32.mrf.mxu0 }
 0xac4   : > { %v2122_v20 = vpop.f32.mrf.mxu2 }
 0xaca   : > { %v2145_v60 = vpop.f32.mrf.mxu3 }
 0xacb   : > { %v2146_v61 = vadd.f32 %v2145_v60, %v2122_v20  ;;  %v2171_v3 = vpop.f32.mrf.mxu0 }
 0xacc   : > { %v2125_v42 = vpop.f32.mrf.mxu2 }
 0xacd   : > { %v2169_v62 = vadd.f32 %v2168_v21, %v2146_v61 }
 0xacf   : > { %v2237_v0 = vmax.f32 %v2169_v62, 0.0 }
 0xad1   : > { %v2242_v51 = vmul.f32 %v3769_v1, %v2237_v0 }
 0xad2   : > { %v2148_v48 = vpop.f32.mrf.mxu3 }
 0xad3   : > { %v2149_v2 = vadd.f32 %v2148_v48, %v2125_v42  ;;  %v2244_v6 = vpack.c.bf16 %v2242_v51, %v2242_v51 }
 0xad4   : > { %v2214_v4 = vpop.f32.mrf.mxu2 }
 0xad5   : > { %v2172_v59 = vadd.f32 %v2171_v3, %v2149_v2  ;;  %v2215_v8 = vadd.f32 %v2214_v4, %v2194_v5  ;;  %v2248_v53 = vunpack.c.l.b16 %v2244_v6  ;;  %v2426_v6 = vld [vmem:[%s3928_s18] sm:$0xff] }
 0xad7   : > { %v2238_v49 = vmax.f32 %v2172_v59, 0.0 }
 0xad9   : > { %v2243_v7 = vmul.f32 %v3769_v1, %v2238_v49 }
 0xada   : > { %v2234_v9 = vpop.f32.mrf.mxu3 }
 0xadb   : > { %v2245_v11 = vpack.c.bf16 %v2243_v7, %v2243_v7  ;;  %v2235_v12 = vadd.f32 %v2234_v9, %v2215_v8  ;;  %v2427_v7 = vld [vmem:[%s3928_s18 + $0x8] sm:$0xff] }
 0xadd   : > { %v2249_v16 = vunpack.c.l.b16 %v2245_v11  ;;  %v2341_v17 = vpack.c.bf16 %v2235_v12, %v2235_v12  ;;  %v2770_v12 = vld [vmem:[%s3927_s17 + $0x4] sm:$0xf] }
 0xadf   : > { %v2364_v18 = vsel %vm916_vm2, %v2341_v17, 0  ;;  %v2250_v19 = vpack.c.b16 %v2249_v16, %v2248_v53  ;;  %v2747_v53 = vld [vmem:[%s3927_s17 + $0x8] sm:$0xf0]  ;;  %vm2622_vm2 = vcmask 7168  }
 0xae0   : > { %2373 = vmatpush.bf16.msra.mxu1 %v2364_v18  ;;  %v2750_v16 = vor.u32 %v2770_v12, %v2747_v53 }
 0xae1   : > { %2251 = vrot.lane.b32.xlu2 %v2250_v19, %s3947_s1 }
 0xae3   : > { %2742 = vmatmul.msk.bf16.vlgmr.msra.gmra.mxu1 %vm2359_vm13, %v2769_v14 }
 0xb3b   : > { %v2252_v63 = vpop.permute.xlu2 %2251 }
 0xb3c   : > { %v2255_v22 = vsel %vm2253_vm14, 0, %v2252_v63 }
 0xb3d   : > { %v2257_v58 = vsel %vm2256_vm15, %v2255_v22, 0  ;;  %v2745_v22 = vld [vmem:[%s3927_s17] sm:$0xf] }
 0xb3e   : > { %2272 = vrot.lane.b32.xlu2 %v2257_v58, %s3946_s7  ;;  %2275 = vrot.lane.b32.xlu1 %v2257_v58, %s3945_s0 }
 0xb3f   : > { %2278 = vrot.lane.b32.xlu0 %v2257_v58, %s3939_s3  ;;  %s3973_s3 = smov 117  }
 0xb46   : > { %2263 = vrot.lane.b32.xlu2 %v2257_v58, %s3937_s4  ;;  %2266 = vrot.lane.b32.xlu1 %v2257_v58, %s3941_s29  ;;  %s3972_s4 = smov 118   ;;  %s3976_s29 = smov 108  }
 0xb47   : > { %2269 = vrot.lane.b32.xlu0 %v2257_v58, %s3943_s28  ;;  %s2765_s28 = sshll.u32 %s3978_s8, 4 }
 0xb4e   : > { %2290 = vperm.xlu2 %2813, %v2286_v23   ;;  %2281 = vrot.lane.b32.xlu1 %v2257_v58, %s2876_s5 }
 0xb4f   : > { %2260 = vrot.lane.b32.xlu0 %v2257_v58, %s2869_s30 }
 0xb56   : > { %2351 = vperm.xlu2 %2813, %v2343_v13   ;;  %2346 = vperm.xlu1 %2814, %v2342_v25  }
 0xb57   : > { %2295 = vperm.xlu0 %2812, %v2287_v10  }
 0xb60   : > { %v2375_v29 = vpop.f32.mrf.mxu1 }
 0xb68   : > { %v2377_v44 = vpop.f32.mrf.mxu1 }
 0xb98   : > { %v2273_v24 = vpop.permute.xlu2 %2272 }
 0xba0   : > { %v2264_v39 = vpop.permute.xlu2 %2263 }
 0xba8   : > { %v2291_v50 = vpop.permute.xlu2 %2290 }
 0xbb0   : > { %v2276_v15 = vpop.permute.xlu1 %2275  ;;  %v2352_v55 = vpop.permute.xlu2 %2351 }
 0xbb1   : > { %v2279_v33 = vpop.permute.xlu0 %2278  ;;  %v2378_v21 = vadd.f32 %v2377_v44, %v2352_v55 }
 0xbb2   : > { %2311 = vmatpush.bf16.msra.mxu0 %v2279_v33 }
 0xbb6   : > { %2312 = vmatpush.bf16.msra.mxu0 %v2276_v15 }
 0xbb8   : > { %v2267_v34 = vpop.permute.xlu1 %2266 }
 0xbb9   : > { %v2270_v35 = vpop.permute.xlu0 %2269 }
 0xbba   : > { %2313 = vmatpush.bf16.msra.mxu0 %v2273_v24 }
 0xbbe   : > { %2314 = vmatpush.bf16.msra.mxu0 %v2270_v35 }
 0xbc0   : > { %v2282_v38 = vpop.permute.xlu1 %2281 }
 0xbc1   : > { %2332 = vmatpush.bf16.msra.mxu3 %v2282_v38  ;;  %v2261_v40 = vpop.permute.xlu0 %2260 }
 0xbc2   : > { %2315 = vmatpush.bf16.msra.mxu0 %v2267_v34 }
 0xbc4   : > { %2737 = vmatmul.msk.bf16.vlgmr.msra.gmra.mxu3 %vm2307_vm0, %v2736_v30 }
 0xbc6   : > { %2316 = vmatpush.bf16.msra.mxu0 %v2264_v39 }
 0xbc8   : > { %v2347_v43 = vpop.permute.xlu1 %2346 }
 0xbc9   : > { %v2376_v54 = vadd.f32 %v2375_v29, %v2347_v43  ;;  %v2296_v56 = vpop.permute.xlu0 %2295 }
 0xbca   : > { %2317 = vmatpush.bf16.msra.mxu0 %v2261_v40 }
 0xbce   : > { %2318 = vmatpush.bf16.msra.mxu0 %v2257_v58  ;;  %v2771_v58 = vld [vmem:[%s3927_s17 + $0x4] sm:$0xf0] }
 0xbcf   : > { %v2746_v23 = vor.u32 %v2771_v58, %v2745_v22  ;;  %v2589_v58 = vld [vmem:[%s3931_s21] sm:$0xff] }
 0xbd1   : > { %2319 = vmatmul.bf16.vlgmr.msra.gmra.mxu0 %v2732_v46 }
 0xc47   : > { %v2334_v47 = vpop.f32.mrf.mxu3 }
 0xc4e   : > { %v2320_v27 = vpop.f32.mrf.mxu0 }
 0xc4f   : > { %v2321_v28 = vadd.f32 %v2320_v27, %v2291_v50  ;;  %v2336_v20 = vpop.f32.mrf.mxu3 }
 0xc51   : > { %v2335_v31 = vadd.f32 %v2334_v47, %v2321_v28  ;;  %v2523_v28 = vld [vmem:[%s3930_s20 + $0x8] sm:$0xff] }
 0xc53   : > { %v2380_v41 = vadd.f32 %v2376_v54, %v2335_v31  ;;  %v2522_v54 = vld [vmem:[%s3930_s20] sm:$0xff] }
 0xc55   : > { %v2382_v52 = vmax.f32 %v2380_v41, 0.0 }
 0xc56   : > { %v2322_v26 = vpop.f32.mrf.mxu0 }
 0xc57   : > { %v2323_v57 = vadd.f32 %v2322_v26, %v2296_v56  ;;  %v3814_v61 = vmul.f32 %v3769_v1, %v2382_v52  ;;  %v2772_v26 = vld [vmem:[%s3929_s19 + $0x4] sm:$0xf]  ;;  %v2756_v52 = vld [vmem:[%s3929_s19 + $0x8] sm:$0xf0] }
 0xc59   : > { %v2337_v60 = vadd.f32 %v2336_v20, %v2323_v57  ;;  %v2386_v0 = vpack.c.bf16 %v3814_v61, %v3814_v61  ;;  %v2759_v20 = vor.u32 %v2772_v26, %v2756_v52 }
 0xc5b   : > { %v2381_v42 = vadd.f32 %v2378_v21, %v2337_v60  ;;  %v2390_v3 = vunpack.c.l.b16 %v2386_v0 }
 0xc5d   : > { %v2383_v62 = vmax.f32 %v2381_v42, 0.0  ;;  %v2754_v42 = vld [vmem:[%s3929_s19] sm:$0xf] }
 0xc5f   : > { %v3819_v48 = vmul.f32 %v3769_v1, %v2383_v62  ;;  %v2773_v62 = vld [vmem:[%s3929_s19 + $0x4] sm:$0xf0] }
 0xc60   : > { %v2755_v0 = vor.u32 %v2773_v62, %v2754_v42 }
 0xc61   : > { %v2387_v2 = vpack.c.bf16 %v3819_v48, %v3819_v48 }
 0xc63   : > { %v2391_v51 = vunpack.c.l.b16 %v2387_v2 }
 0xc65   : > { %v2392_v59 = vpack.c.b16 %v2391_v51, %v2390_v3 }
 0xc67   : > { %2393 = vrot.lane.b32.xlu0 %v2392_v59, %s3947_s1 }
 0xcd9   : > { %v2394_v4 = vpop.permute.xlu0 %2393 }
 0xcda   : > { %v2396_v49 = vsel %vm2253_vm14, 0, %v2394_v4 }
 0xcdb   : > { %v2397_v5 = vsel %vm2256_vm15, %v2396_v49, 0 }
 0xcdc   : > { %2412 = vrot.lane.b32.xlu0 %v2397_v5, %s3946_s7  ;;  %2415 = vrot.lane.b32.xlu2 %v2397_v5, %s3945_s0 }
 0xcdd   : > { %2418 = vrot.lane.b32.xlu1 %v2397_v5, %s3970_s9 }
 0xce4   : > { %2403 = vrot.lane.b32.xlu0 %v2397_v5, %s3971_s2  ;;  %2406 = vrot.lane.b32.xlu2 %v2397_v5, %s3972_s4 }
 0xce5   : > { %2409 = vrot.lane.b32.xlu1 %v2397_v5, %s3973_s3 }
 0xcec   : > { %2430 = vperm.xlu0 %2812, %v2426_v6   ;;  %2421 = vrot.lane.b32.xlu2 %v2397_v5, %s2876_s5 }
 0xced   : > { %2400 = vrot.lane.b32.xlu1 %v2397_v5, %s2869_s30 }
 0xcf5   : > { %2435 = vperm.xlu1 %2814, %v2427_v7  }
 0xd36   : > { %v2416_v8 = vpop.permute.xlu2 %2415 }
 0xd3e   : > { %v2407_v9 = vpop.permute.xlu2 %2406 }
 0xd46   : > { %v2422_v11 = vpop.permute.xlu2 %2421 }
 0xd47   : > { %2471 = vmatpush.bf16.msra.mxu2 %v2422_v11 }
 0xd4a   : > { %2751 = vmatmul.msk.bf16.vlgmr.msra.gmra.mxu2 %vm2307_vm0, %v2750_v16 }
 0xd4e   : > { %v2413_v18 = vpop.permute.xlu0 %2412 }
 0xd4f   : > { %v2419_v17 = vpop.permute.xlu1 %2418 }
 0xd50   : > { %2450 = vmatpush.bf16.msrb.mxu3 %v2419_v17 }
 0xd54   : > { %2451 = vmatpush.bf16.msrb.mxu3 %v2416_v8 }
 0xd56   : > { %v2404_v14 = vpop.permute.xlu0 %2403 }
 0xd57   : > { %v2410_v19 = vpop.permute.xlu1 %2409 }
 0xd58   : > { %2452 = vmatpush.bf16.msrb.mxu3 %v2413_v18 }
 0xd5c   : > { %2453 = vmatpush.bf16.msrb.mxu3 %v2410_v19 }
 0xd5e   : > { %v2431_v13 = vpop.permute.xlu0 %2430 }
 0xd5f   : > { %v2401_v63 = vpop.permute.xlu1 %2400 }
 0xd60   : > { %2454 = vmatpush.bf16.msrb.mxu3 %v2407_v9 }
 0xd64   : > { %2455 = vmatpush.bf16.msrb.mxu3 %v2404_v14 }
 0xd67   : > { %v2436_v24 = vpop.permute.xlu1 %2435 }
 0xd68   : > { %2456 = vmatpush.bf16.msrb.mxu3 %v2401_v63 }
 0xd6c   : > { %2457 = vmatpush.bf16.msrb.mxu3 %v2397_v5 }
 0xd6f   : > { %2458 = vmatmul.bf16.vlgmr.msrb.gmra.mxu3 %v2746_v23 }
 0xdcd   : > { %v2473_v25 = vpop.f32.mrf.mxu2 }
 0xdd5   : > { %v2475_v37 = vpop.f32.mrf.mxu2 }
 0xdf2   : > { %v2459_v10 = vpop.f32.mrf.mxu3 }
 0xdf3   : > { %v2460_v15 = vadd.f32 %v2459_v10, %v2431_v13 }
 0xdf5   : > { %v2474_v33 = vadd.f32 %v2473_v25, %v2460_v15  ;;  %v2592_v25 = vld [vmem:[%s3932_s22 + $0x8] sm:$0xff] }
 0xdf7   : > { %v2478_v34 = vmax.f32 %v2474_v33, 0.0 }
 0xdf9   : > { %v2480_v38 = vmul.f32 %v3769_v1, %v2478_v34 }
 0xdfa   : > { %v2461_v35 = vpop.f32.mrf.mxu3 }
 0xdfb   : > { %v2462_v36 = vadd.f32 %v2461_v35, %v2436_v24  ;;  %v2482_v40 = vpack.c.bf16 %v2480_v38, %v2480_v38 }
 0xdfd   : > { %v2476_v30 = vadd.f32 %v2475_v37, %v2462_v36  ;;  %v2486_v46 = vunpack.c.l.b16 %v2482_v40 }
 0xdff   : > { %v2479_v39 = vmax.f32 %v2476_v30, 0.0 }
 0xe01   : > { %v2481_v45 = vmul.f32 %v3769_v1, %v2479_v39 }
 0xe03   : > { %v2483_v32 = vpack.c.bf16 %v2481_v45, %v2481_v45 }
 0xe05   : > { %v2487_v29 = vunpack.c.l.b16 %v2483_v32 }
 0xe07   : > { %v2488_v50 = vpack.c.b16 %v2487_v29, %v2486_v46 }
 0xe09   : > { %2489 = vrot.lane.b32.xlu2 %v2488_v50, %s3974_s10 }
 0xe63   : > { %v2490_v43 = vpop.permute.xlu2 %2489 }
 0xe64   : > { %v2492_v47 = vsel %vm2253_vm14, 0, %v2490_v43 }
 0xe65   : > { %v2493_v27 = vsel %vm2256_vm15, %v2492_v47, 0 }
 0xe66   : > { %2508 = vrot.lane.b32.xlu2 %v2493_v27, %s3975_s6  ;;  %2511 = vrot.lane.b32.xlu1 %v2493_v27, %s3976_s29 }
 0xe67   : > { %2514 = vrot.lane.b32.xlu0 %v2493_v27, %s3970_s9 }
 0xe6e   : > { %2499 = vrot.lane.b32.xlu2 %v2493_v27, %s3971_s2  ;;  %2502 = vrot.lane.b32.xlu1 %v2493_v27, %s3972_s4 }
 0xe6f   : > { %2505 = vrot.lane.b32.xlu0 %v2493_v27, %s3973_s3 }
 0xe76   : > { %2531 = vperm.xlu2 %2813, %v2523_v28   ;;  %2517 = vrot.lane.b32.xlu1 %v2493_v27, %s2876_s5 }
 0xe77   : > { %2496 = vrot.lane.b32.xlu0 %v2493_v27, %s2869_s30  ;;  %s808_s30 = scalar_lea.vmem %s3936_s26, %s2765_s28 }
 0xe7f   : > { %2526 = vperm.xlu0 %2812, %v2522_v54  }
 0xec0   : > { %v2509_v55 = vpop.permute.xlu2 %2508 }
 0xec8   : > { %v2500_v21 = vpop.permute.xlu2 %2499 }
 0xed0   : > { %v2532_v6 = vpop.permute.xlu2 %2531 }
 0xed8   : > { %v2512_v31 = vpop.permute.xlu1 %2511 }
 0xed9   : > { %v2515_v41 = vpop.permute.xlu0 %2514 }
 0xeda   : > { %2546 = vmatpush.bf16.msrb.mxu1 %v2515_v41 }
 0xede   : > { %2547 = vmatpush.bf16.msrb.mxu1 %v2512_v31 }
 0xee0   : > { %v2503_v44 = vpop.permute.xlu1 %2502 }
 0xee1   : > { %v2506_v56 = vpop.permute.xlu0 %2505 }
 0xee2   : > { %2548 = vmatpush.bf16.msrb.mxu1 %v2509_v55 }
 0xee6   : > { %2549 = vmatpush.bf16.msrb.mxu1 %v2506_v56 }
 0xee8   : > { %v2518_v57 = vpop.permute.xlu1 %2517 }
 0xee9   : > { %2567 = vmatpush.bf16.msrb.mxu0 %v2518_v57  ;;  %v2497_v60 = vpop.permute.xlu0 %2496 }
 0xeea   : > { %2550 = vmatpush.bf16.msrb.mxu1 %v2503_v44 }
 0xeec   : > { %2760 = vmatmul.msk.bf16.vlgmr.msrb.gmra.mxu0 %vm2307_vm0, %v2759_v20 }
 0xeee   : > { %2551 = vmatpush.bf16.msrb.mxu1 %v2500_v21 }
 0xef1   : > { %v2527_v2 = vpop.permute.xlu0 %2526 }
 0xef2   : > { %2552 = vmatpush.bf16.msrb.mxu1 %v2497_v60 }
 0xef6   : > { %2553 = vmatpush.bf16.msrb.mxu1 %v2493_v27 }
 0xef9   : > { %2554 = vmatmul.bf16.vlgmr.msrb.gmra.mxu1 %v2755_v0 }
 0xf69   : > { %v2569_v3 = vpop.f32.mrf.mxu0 }
 0xf71   : > { %v2571_v11 = vpop.f32.mrf.mxu0 }
 0xf76   : > { %v2555_v51 = vpop.f32.mrf.mxu1 }
 0xf77   : > { %v2556_v59 = vadd.f32 %v2555_v51, %v2527_v2 }
 0xf79   : > { %v2570_v4 = vadd.f32 %v2569_v3, %v2556_v59 }
 0xf7b   : > { %v2574_v49 = vadd.f32 %v2570_v4, %v3814_v61 }
 0xf7d   : > { %v2576_v5 = vmax.f32 %v2574_v49, 0.0 }
 0xf7e   : > { %v2557_v7 = vpop.f32.mrf.mxu1 }
 0xf7f   : > { %v2558_v8 = vadd.f32 %v2557_v7, %v2532_v6  ;;  %v2578_v9 = vmul.f32 %v3769_v1, %v2576_v5 }
 0xf81   : > { %v2572_v12 = vadd.f32 %v2571_v11, %v2558_v8  ;;  %v2581_v53 = vsel %vm2580_vm1, %v2578_v9, 0.0 }
 0xf82   : > { %2582 = vadd.xlane.f32.xlu2 %v2581_v53 }
 0xf83   : > { %v2575_v16 = vadd.f32 %v2572_v12, %v3819_v48  ;;  %v2590_v48 = vld [vmem:[%s3931_s21 + $0x8] sm:$0xff] }
 0xf85   : > { %v2577_v17 = vmax.f32 %v2575_v16, 0.0 }
 0xf87   : > { %v2579_v18 = vmul.f32 %v3769_v1, %v2577_v17  ;;  %v2591_v1 = vld [vmem:[%s3932_s22] sm:$0xff] }
 0xf89   : > { %v2584_v19 = vsel %vm2580_vm1, %v2579_v18, 0.0 }
 0xf8a   : > { %2585 = vadd.xlane.f32.xlu1 %v2584_v19 }
 0xff5   : > { %v2583_v61 = vpop.xlane.xlu2 %2582 }
 0xff6   : > { %v2587_v22 = vmul.f32 0.015625, %v2583_v61 }
 0xffd   : > { %v2586_v14 = vpop.xlane.xlu1 %2585 }
 0xffe   : > { %v2588_v63 = vmul.f32 0.015625, %v2586_v14 }
0x1000   : > { %2613 = vmatpush.msrb.mxu2 %v2588_v63 }
0x1002   : > { %2614 = vmatpush.msrb.mxu2 %v2587_v22 }
0x1003   : > { %2761 = vmatmul.msk.f32.vlgmr.msrb.gmra.mxu2 %vm2307_vm0, %v2589_v58 }
0x100b   : > { %2762 = vmatmul.msk.f32.gmra.mxu2 %vm2307_vm0, %v2590_v48 }
0x1086   : > { %v2616_v23 = vpop.f32.mrf.mxu2 }
0x1087   : > { %v2617_v13 = vadd.f32 %v2616_v23, %v2591_v1 }
0x1089   : > { %2623 = vst.msk [vmem:[%s808_s30] sm:$0xff] %vm2622_vm2, %v2617_v13 }
0x108e   : > { %v2619_v10 = vpop.f32.mrf.mxu2 }
0x108f   : > { %v2620_v15 = vadd.f32 %v2619_v10, %v2592_v25 }
0x1091   : > { %2624 = vst.msk [vmem:[%s808_s30 + $0x8] sm:$0xff] %vm2622_vm2, %v2620_v15 }
0x1092 PF: > { %s37_s27 = sadd.s32 1, %s2856_s27  }
0x1093   : > { %p34_p7 = scmp.ge.s32.totalorder %s37_s27, 4  }
0x1095   :  { %36 = sbr.rel (!%p34_p7) target bundleno = 13 (0xd), region = 159 }
0x109a   :  { %2646 = vsyncpa [#allocation3], 1 }
0x109b   :  { %2648 = vsyncpa [#allocation3 + $0x1], 1 }

</bundles_post_ra>
